<compile_context>
chip_gen: v5e
topology: v5e:2x2
jax: 0.10.0
libtpu: 0.0.40
codegen_flags: <defaults>
</compile_context>

<pallas_src>
import functools

import jax
import jax.numpy as jnp
from jax.experimental import pallas as pl
from jax.experimental.pallas import tpu as pltpu

NEG_SLOPE = 0.01           # torch.nn.LeakyReLU default
BN_EPS = 1e-5              # torch.nn.BatchNorm2d default
_VMEM_LIMIT_BYTES = 48 * 1024 * 1024   # headroom under v7x's 64 MiB physical VMEM


def _leaky(x):
    return jnp.where(x > 0, x, NEG_SLOPE * x)


def _conv3x3_gemm(pad, w_ref, oh, ow):
    """3x3 conv as 3 accumulated GEMMs (grouped by kernel row kh).

    pad:   (oh+2, ow+2, C) value, already in the MXU operand dtype.
    w_ref: (9*C, Cout) weight ref, rows ordered (kh, kw, cin).
    Returns (oh*ow, Cout) f32.
    """
    c = pad.shape[-1]
    acc = None
    for dh in range(3):                                  # static 3-iter unroll
        slab = jnp.concatenate(
            [pad[dh:dh + oh, dw:dw + ow, :] for dw in range(3)], axis=-1
        ).reshape(oh * ow, 3 * c)                        # (M, 3*C), MXU dtype
        part = jnp.dot(slab, w_ref[dh * 3 * c:(dh + 1) * 3 * c, :],
                       preferred_element_type=jnp.float32)
        acc = part if acc is None else acc + part
    return acc


def _resblock_conv_kernel(xh_ref, xr_ref, w1_ref, b1_ref, w2_ref, b2_ref,
                          w3_ref, b3_ref, s_ref, sum_ref, m2_ref,
                          *, identity_residual):
    """Pass 1: conv1 -> conv2 -> conv3(+residual) per row tile + BN partials."""
    TH = xh_ref.shape[2] - 4
    W = xh_ref.shape[3] - 2
    Cin = xh_ref.shape[4]
    C2 = w1_ref.shape[1]
    Cout = w3_ref.shape[1]
    mdt = w1_ref.dtype                       # MXU operand dtype (bf16 or f32)

    t = pl.program_id(1)
    t_last = pl.num_programs(1) - 1

    # ---- conv1 over the halo'd tile -> h1 on TH+2 rows (conv2's row halo) ---
    xh = xh_ref[0, 0]                                    # (TH+4, W+2, Cin) mdt
    h1 = _leaky(_conv3x3_gemm(xh, w1_ref, TH + 2, W) + b1_ref[...])
    h1 = h1.reshape(TH + 2, W, C2)                       # f32

    # Rows that fall outside the image (first/last row tile) are conv2's
    # zero-padding, not conv1 outputs -> zero them via two scalar multiplies.
    keep_top = (t > 0).astype(h1.dtype)
    keep_bot = (t < t_last).astype(h1.dtype)
    h1 = jnp.concatenate(
        [h1[0:1] * keep_top, h1[1:TH + 1], h1[TH + 1:TH + 2] * keep_bot],
        axis=0)

    # Pad the W columns and cast ONCE to the MXU dtype (bf16 "halo" staging).
    zcol = jnp.zeros((TH + 2, 1, C2), h1.dtype)
    h1p = jnp.concatenate([zcol, h1, zcol], axis=1).astype(mdt)

    # ---- conv2 --------------------------------------------------------------
    h2 = _leaky(_conv3x3_gemm(h1p, w2_ref, TH, W) + b2_ref[...])   # (TH*W, C2)

    # ---- conv3 (1x1) + residual (residual x read late -> short live range) --
    x_c = xr_ref[0, 0].reshape(TH * W, Cin)                        # f32
    if identity_residual:
        s = (jnp.dot(h2.astype(mdt), w3_ref[...],
                     preferred_element_type=jnp.float32)
             + b3_ref[...] + x_c)
    else:
        fused = jnp.concatenate([h2.astype(mdt), x_c.astype(mdt)], axis=-1)
        s = (jnp.dot(fused, w3_ref[...],
                     preferred_element_type=jnp.float32) + b3_ref[...])

    # ---- per-tile BatchNorm partials (centered M2 -> no cancellation) -------
    inv_mt = jnp.float32(1.0 / (TH * W))
    sum_t = jnp.sum(s, axis=0, keepdims=True)            # (1, Cout) f32
    mean_t = sum_t * inv_mt
    d = s - mean_t
    m2_t = jnp.sum(d * d, axis=0, keepdims=True)         # (1, Cout) f32

    s_ref[0, 0] = s.reshape(TH, W, Cout)
    sum_ref[0, 0] = sum_t
    m2_ref[0, 0] = m2_t


def _bn_act_kernel(s_ref, scale_ref, shift_ref, y_ref):
    """Pass 2: fused BatchNorm normalize + affine + final LeakyReLU per tile."""
    y_ref[0, 0] = _leaky(s_ref[0, 0] * scale_ref[...] + shift_ref[...])


def _pick_tile_rows(h, target=64):
    th = min(target, h)
    while h % th:
        th -= 1
    return th


@functools.partial(jax.jit, static_argnames=("use_bf16_matmul", "tile_rows"))
def resblock_forward(x_nchw, params, *, use_bf16_matmul=True, tile_rows=None):
    """x_nchw: (N, Cin, H, W) f32 -> (N, Cout, H, W) f32 (PyTorch layout)."""
    w1, b1, w2, b2, w3, b3, wr, br, gamma, beta = params
    N, Cin, H, W = x_nchw.shape
    C2 = w1.shape[0]
    Cout = w3.shape[0]
    identity_residual = wr is None
    mdt = jnp.bfloat16 if use_bf16_matmul else jnp.float32

    TH = _pick_tile_rows(H) if tile_rows is None else tile_rows
    assert H % TH == 0, "tile_rows must divide H"
    n_h = H // TH
    M_t = TH * W
    M_total = N * H * W

    # Channels-last; halo'd row tiles built once in XLA and cast once to the
    # MXU dtype -- the BlockSpec DMA then delivers each (TH+4, W+2, Cin) tile.
    x_nhwc = jnp.transpose(x_nchw, (0, 2, 3, 1)).astype(jnp.float32)
    xp = jnp.pad(x_nhwc, ((0, 0), (2, 2), (1, 1), (0, 0)))
    row_idx = jnp.arange(n_h)[:, None] * TH + jnp.arange(TH + 4)[None, :]
    x_halo = xp[:, row_idx].astype(mdt)                  # (N, n_h, TH+4, W+2, Cin)
    x_res = x_nhwc.reshape(N, n_h, TH, W, Cin)           # f32 residual input

    # Conv weights re-laid out once into im2col GEMM layout (rows = (kh,kw,cin)).
    w1_k = jnp.transpose(w1, (2, 3, 1, 0)).reshape(9 * Cin, C2).astype(mdt)
    w2_k = jnp.transpose(w2, (2, 3, 1, 0)).reshape(9 * C2, C2).astype(mdt)
    w3_m = w3.reshape(Cout, C2).T
    if identity_residual:
        w3_k = w3_m.astype(mdt)
        b3_k = b3.reshape(1, Cout).astype(jnp.float32)
    else:
        wr_m = wr.reshape(Cout, Cin).T
        w3_k = jnp.concatenate([w3_m, wr_m], axis=0).astype(mdt)   # (C2+Cin, Cout)
        b3_k = (b3 + br).reshape(1, Cout).astype(jnp.float32)
    K3 = w3_k.shape[0]

    kernel1 = functools.partial(_resblock_conv_kernel,
                                identity_residual=identity_residual)
    itemsize = 2 if use_bf16_matmul else 4
    flops1 = 2 * M_total * (9 * Cin * C2 + 9 * C2 * C2 + K3 * Cout)
    bytes1 = (N * n_h * (TH + 4) * (W + 2) * Cin * itemsize
              + M_total * Cin * 4
              + (9 * Cin * C2 + 9 * C2 * C2 + K3 * Cout) * itemsize
              + M_total * Cout * 4 + 2 * N * n_h * Cout * 4)

    s_tiles, sum_tiles, m2_tiles = pl.pallas_call(
        kernel1,
        out_shape=(jax.ShapeDtypeStruct((N, n_h, TH, W, Cout), jnp.float32),
                   jax.ShapeDtypeStruct((N, n_h, 1, Cout), jnp.float32),
                   jax.ShapeDtypeStruct((N, n_h, 1, Cout), jnp.float32)),
        grid_spec=pltpu.PrefetchScalarGridSpec(
            num_scalar_prefetch=0,
            grid=(N, n_h),
            in_specs=[
                pl.BlockSpec((1, 1, TH + 4, W + 2, Cin),
                             lambda n, t: (n, t, 0, 0, 0)),
                pl.BlockSpec((1, 1, TH, W, Cin), lambda n, t: (n, t, 0, 0, 0)),
                pl.BlockSpec((9 * Cin, C2), lambda n, t: (0, 0)),
                pl.BlockSpec((1, C2), lambda n, t: (0, 0)),
                pl.BlockSpec((9 * C2, C2), lambda n, t: (0, 0)),
                pl.BlockSpec((1, C2), lambda n, t: (0, 0)),
                pl.BlockSpec((K3, Cout), lambda n, t: (0, 0)),
                pl.BlockSpec((1, Cout), lambda n, t: (0, 0)),
            ],
            out_specs=[
                pl.BlockSpec((1, 1, TH, W, Cout), lambda n, t: (n, t, 0, 0, 0)),
                pl.BlockSpec((1, 1, 1, Cout), lambda n, t: (n, t, 0, 0)),
                pl.BlockSpec((1, 1, 1, Cout), lambda n, t: (n, t, 0, 0)),
            ]),
        compiler_params=pltpu.CompilerParams(
            dimension_semantics=("parallel", "parallel"),
            vmem_limit_bytes=_VMEM_LIMIT_BYTES),
        cost_estimate=pl.CostEstimate(flops=flops1, transcendentals=0,
                                      bytes_accessed=bytes1),
    )(x_halo, x_res, w1_k,
      b1.astype(jnp.float32).reshape(1, C2),
      w2_k, b2.astype(jnp.float32).reshape(1, C2),
      w3_k, b3_k)

    # ---- BatchNorm stats: Chan/Welford merge of per-tile partials (f32) -----
    sum_flat = sum_tiles.reshape(-1, Cout)
    m2_flat = m2_tiles.reshape(-1, Cout)
    mean = jnp.sum(sum_flat, axis=0) / M_total                      # (Cout,)
    mean_t = sum_flat / M_t
    m2 = jnp.sum(m2_flat, axis=0) + M_t * jnp.sum((mean_t - mean) ** 2, axis=0)
    var = m2 / M_total                                              # biased var
    scale = (gamma.astype(jnp.float32) * jax.lax.rsqrt(var + BN_EPS)
             ).reshape(1, Cout)
    shift = beta.astype(jnp.float32).reshape(1, Cout) - mean.reshape(1, Cout) * scale

    # ---- Pass 2: normalize + affine + final LeakyReLU ------------------------
    flops2 = 4 * M_total * Cout
    bytes2 = 2 * M_total * Cout * 4
    y_tiles = pl.pallas_call(
        _bn_act_kernel,
        out_shape=jax.ShapeDtypeStruct((N, n_h, TH, W, Cout), jnp.float32),
        grid_spec=pltpu.PrefetchScalarGridSpec(
            num_scalar_prefetch=0,
            grid=(N, n_h),
            in_specs=[
                pl.BlockSpec((1, 1, TH, W, Cout), lambda n, t: (n, t, 0, 0, 0)),
                pl.BlockSpec((1, Cout), lambda n, t: (0, 0)),
                pl.BlockSpec((1, Cout), lambda n, t: (0, 0)),
            ],
            out_specs=pl.BlockSpec((1, 1, TH, W, Cout),
                                   lambda n, t: (n, t, 0, 0, 0))),
        compiler_params=pltpu.CompilerParams(
            dimension_semantics=("parallel", "parallel"),
            vmem_limit_bytes=_VMEM_LIMIT_BYTES),
        cost_estimate=pl.CostEstimate(flops=flops2, transcendentals=0,
                                      bytes_accessed=bytes2),
    )(s_tiles, scale, shift)

    y_nhwc = y_tiles.reshape(N, H, W, Cout)
    return jnp.transpose(y_nhwc, (0, 3, 1, 2))


def _reference_forward(x_nchw, params):
    """Pure-XLA reference with the exact module semantics (f32, HIGHEST prec)."""
    w1, b1, w2, b2, w3, b3, wr, br, gamma, beta = params
    dn = ("NCHW", "OIHW", "NCHW")

    def conv(x, w, b, pad):
        y = jax.lax.conv_general_dilated(
            x, w, window_strides=(1, 1), padding=[(pad, pad), (pad, pad)],
            dimension_numbers=dn, precision=jax.lax.Precision.HIGHEST)
        return y + b.reshape(1, -1, 1, 1)

    h = _leaky(conv(x_nchw, w1, b1, 1))
    h = _leaky(conv(h, w2, b2, 1))
    s = conv(h, w3, b3, 0)
    s = s + (x_nchw if wr is None else conv(x_nchw, wr, br, 0))
    mean = jnp.mean(s, axis=(0, 2, 3), keepdims=True)
    var = jnp.mean((s - mean) ** 2, axis=(0, 2, 3), keepdims=True)
    y = (s - mean) * jax.lax.rsqrt(var + BN_EPS)
    y = y * gamma.reshape(1, -1, 1, 1) + beta.reshape(1, -1, 1, 1)
    return _leaky(y)


def make_params(key, in_ch, out_ch):
    """Deterministic synthetic parameters in the PyTorch module's shapes."""
    c2 = 2 * out_ch
    ks = jax.random.split(key, 8)
    s1 = 1.0 / jnp.sqrt(9.0 * in_ch)
    s2 = 1.0 / jnp.sqrt(9.0 * c2)
    s3 = 1.0 / jnp.sqrt(1.0 * c2)
    w1 = jax.random.normal(ks[0], (c2, in_ch, 3, 3), jnp.float32) * s1
    b1 = jax.random.normal(ks[1], (c2,), jnp.float32) * s1
    w2 = jax.random.normal(ks[2], (c2, c2, 3, 3), jnp.float32) * s2
    b2 = jax.random.normal(ks[3], (c2,), jnp.float32) * s2
    w3 = jax.random.normal(ks[4], (out_ch, c2, 1, 1), jnp.float32) * s3
    b3 = jax.random.normal(ks[5], (out_ch,), jnp.float32) * s3
    if in_ch == out_ch:
        wr, br = None, None                     # nn.Identity() residual
    else:
        sr = 1.0 / jnp.sqrt(1.0 * in_ch)
        wr = jax.random.normal(ks[6], (out_ch, in_ch, 1, 1), jnp.float32) * sr
        br = jax.random.normal(ks[7], (out_ch,), jnp.float32) * sr
    gamma = jnp.ones((out_ch,), jnp.float32)    # BatchNorm2d affine defaults
    beta = jnp.zeros((out_ch,), jnp.float32)
    return (w1, b1, w2, b2, w3, b3, wr, br, gamma, beta)


if __name__ == "__main__":
    key = jax.random.PRNGKey(0)
    k_x, k_p, k_p2 = jax.random.split(key, 3)

    # Config A: identity residual (in_ch == out_ch), the common CINN case.
    N, in_ch, out_ch, H, W = 2, 4, 4, 16, 16
    x = jax.random.normal(k_x, (N, in_ch, H, W), jnp.float32)
    params = make_params(k_p, in_ch, out_ch)
    y_ref = _reference_forward(x, params)

    # f32-GEMM path, multi-tile grid (exercises boundary-tile halo logic + the
    # cross-tile two-pass BatchNorm).
    y_f32 = jax.block_until_ready(
        resblock_forward(x, params, use_bf16_matmul=False, tile_rows=8))
    assert y_f32.shape == (N, out_ch, H, W)
    assert bool(jnp.allclose(y_f32, y_ref, rtol=5e-2, atol=5e-2)), \
        float(jnp.max(jnp.abs(y_f32 - y_ref)))

    # Default bf16-GEMM / f32-accumulate path (v6e/v7x recommendation).
    y_bf16 = jax.block_until_ready(resblock_forward(x, params, tile_rows=8))
    assert y_bf16.shape == (N, out_ch, H, W)
    assert float(jnp.max(jnp.abs(y_bf16 - y_ref))) < 0.3

    # Single-tile path (tile covers the full height).
    y_one = jax.block_until_ready(resblock_forward(x, params))
    assert float(jnp.max(jnp.abs(y_one - y_ref))) < 0.3

    # Config B: projection residual (in_ch != out_ch) exercises the fused
    # [conv3 ; residual-1x1] single-GEMM path, with a different tile size.
    out_ch_b = 8
    params_b = make_params(k_p2, in_ch, out_ch_b)
    y_b = jax.block_until_ready(resblock_forward(x, params_b, tile_rows=4))
    assert y_b.shape == (N, out_ch_b, H, W)
    y_b_ref = _reference_forward(x, params_b)
    assert float(jnp.max(jnp.abs(y_b - y_b_ref))) < 0.3

    print("KERNEL_OK")
</pallas_src>

<mosaic_0001>
module attributes {stable_mosaic.version = 11 : i64} {
  func.func @_bn_act_kernel(%arg0: i32, %arg1: i32, %arg2: memref<1x1x8x16x4xf32, #tpu.memory_space<vmem>>, %arg3: memref<1x4xf32, #tpu.memory_space<vmem>>, %arg4: memref<1x4xf32, #tpu.memory_space<vmem>>, %arg5: memref<1x1x8x16x4xf32, #tpu.memory_space<vmem>>) attributes {dimension_semantics = [#tpu.dimension_semantics<parallel>, #tpu.dimension_semantics<parallel>], iteration_bounds = array<i64: 2, 2>, scalar_prefetch = 0 : i64, scratch_operands = 0 : i64, tpu.core_type = #tpu.core_type<tc>, window_params = [{transform_indices = @transform_0, window_bounds = array<i64: 1, 1, 8, 16, 4>}, {pipeline_mode = #tpu.pipeline_mode<synchronous>, transform_indices = @transform_1, window_bounds = array<i64: 1, 4>}, {pipeline_mode = #tpu.pipeline_mode<synchronous>, transform_indices = @transform_2, window_bounds = array<i64: 1, 4>}, {transform_indices = @transform_3, window_bounds = array<i64: 1, 1, 8, 16, 4>}]} {
    %c0 = arith.constant 0 : index
    %c0_0 = arith.constant 0 : index
    %c0_1 = arith.constant 0 : index
    %c0_2 = arith.constant 0 : index
    %c0_3 = arith.constant 0 : index
    %0 = vector.load %arg2[%c0, %c0_0, %c0_1, %c0_2, %c0_3] : memref<1x1x8x16x4xf32, #tpu.memory_space<vmem>>, vector<1x1x8x16x4xf32>
    %1 = vector.shape_cast %0 : vector<1x1x8x16x4xf32> to vector<8x16x4xf32>
    %c0_4 = arith.constant 0 : index
    %c0_5 = arith.constant 0 : index
    %2 = vector.load %arg3[%c0_4, %c0_5] : memref<1x4xf32, #tpu.memory_space<vmem>>, vector<1x4xf32>
    %3 = vector.shape_cast %2 : vector<1x4xf32> to vector<1x1x4xf32>
    %4 = vector.broadcast %3 : vector<1x1x4xf32> to vector<8x16x4xf32>
    %5 = arith.mulf %1, %4 : vector<8x16x4xf32>
    %c0_6 = arith.constant 0 : index
    %c0_7 = arith.constant 0 : index
    %6 = vector.load %arg4[%c0_6, %c0_7] : memref<1x4xf32, #tpu.memory_space<vmem>>, vector<1x4xf32>
    %7 = vector.shape_cast %6 : vector<1x4xf32> to vector<1x1x4xf32>
    %8 = vector.broadcast %7 : vector<1x1x4xf32> to vector<8x16x4xf32>
    %9 = arith.addf %5, %8 : vector<8x16x4xf32>
    %cst = arith.constant 0.000000e+00 : f32
    %10 = vector.broadcast %cst : f32 to vector<8x16x4xf32>
    %11 = arith.cmpf ogt, %9, %10 : vector<8x16x4xf32>
    %cst_8 = arith.constant 0.00999999977 : f32
    %12 = vector.broadcast %cst_8 : f32 to vector<8x16x4xf32>
    %13 = arith.mulf %12, %9 : vector<8x16x4xf32>
    %14 = arith.select %11, %9, %13 : vector<8x16x4xi1>, vector<8x16x4xf32>
    %c0_9 = arith.constant 0 : index
    %c0_10 = arith.constant 0 : index
    %c0_11 = arith.constant 0 : index
    %c0_12 = arith.constant 0 : index
    %c0_13 = arith.constant 0 : index
    %15 = vector.load %arg5[%c0_9, %c0_10, %c0_11, %c0_12, %c0_13] : memref<1x1x8x16x4xf32, #tpu.memory_space<vmem>>, vector<1x1x8x16x4xf32>
    %16 = vector.shape_cast %15 : vector<1x1x8x16x4xf32> to vector<8x16x4xf32>
    %17 = vector.shape_cast %14 : vector<8x16x4xf32> to vector<1x1x8x16x4xf32>
    tpu.vector_store %arg5[%c0_9, %c0_10, %c0_11, %c0_12, %c0_13], %17 {strides = array<i32>} : memref<1x1x8x16x4xf32, #tpu.memory_space<vmem>>, vector<1x1x8x16x4xf32>,
    return
  }
  func.func @transform_0(%arg0: i32, %arg1: i32) -> (i32, i32, i32, i32, i32) {
    %c0_i32 = arith.constant 0 : i32
    %c0_i32_0 = arith.constant 0 : i32
    %c0_i32_1 = arith.constant 0 : i32
    %c0_i32_2 = arith.constant 0 : i32
    return %arg0, %arg1, %c0_i32, %c0_i32_0, %c0_i32_1 : i32, i32, i32, i32, i32
  }
  func.func @transform_1(%arg0: i32, %arg1: i32) -> (i32, i32) {
    %c0_i32 = arith.constant 0 : i32
    %c0_i32_0 = arith.constant 0 : i32
    %c0_i32_1 = arith.constant 0 : i32
    return %c0_i32, %c0_i32_0 : i32, i32
  }
  func.func @transform_2(%arg0: i32, %arg1: i32) -> (i32, i32) {
    %c0_i32 = arith.constant 0 : i32
    %c0_i32_0 = arith.constant 0 : i32
    %c0_i32_1 = arith.constant 0 : i32
    return %c0_i32, %c0_i32_0 : i32, i32
  }
  func.func @transform_3(%arg0: i32, %arg1: i32) -> (i32, i32, i32, i32, i32) {
    %c0_i32 = arith.constant 0 : i32
    %c0_i32_0 = arith.constant 0 : i32
    %c0_i32_1 = arith.constant 0 : i32
    %c0_i32_2 = arith.constant 0 : i32
    return %arg0, %arg1, %c0_i32, %c0_i32_0, %c0_i32_1 : i32, i32, i32, i32, i32
  }
}

module attributes {stable_mosaic.version = 11 : i64} {
  func.func @_resblock_conv_kernel(%arg0: i32, %arg1: i32, %arg2: memref<1x1x12x18x4xf32, #tpu.memory_space<vmem>>, %arg3: memref<1x1x8x16x4xf32, #tpu.memory_space<vmem>>, %arg4: memref<36x8xf32, #tpu.memory_space<vmem>>, %arg5: memref<1x8xf32, #tpu.memory_space<vmem>>, %arg6: memref<72x8xf32, #tpu.memory_space<vmem>>, %arg7: memref<1x8xf32, #tpu.memory_space<vmem>>, %arg8: memref<8x4xf32, #tpu.memory_space<vmem>>, %arg9: memref<1x4xf32, #tpu.memory_space<vmem>>, %arg10: memref<1x1x8x16x4xf32, #tpu.memory_space<vmem>>, %arg11: memref<1x1x1x4xf32, #tpu.memory_space<vmem>>, %arg12: memref<1x1x1x4xf32, #tpu.memory_space<vmem>>) attributes {dimension_semantics = [#tpu.dimension_semantics<parallel>, #tpu.dimension_semantics<parallel>], iteration_bounds = array<i64: 2, 2>, scalar_prefetch = 0 : i64, scratch_operands = 0 : i64, tpu.core_type = #tpu.core_type<tc>, window_params = [{transform_indices = @transform_0, window_bounds = array<i64: 1, 1, 12, 18, 4>}, {transform_indices = @transform_1, window_bounds = array<i64: 1, 1, 8, 16, 4>}, {pipeline_mode = #tpu.pipeline_mode<synchronous>, transform_indices = @transform_2, window_bounds = array<i64: 36, 8>}, {pipeline_mode = #tpu.pipeline_mode<synchronous>, transform_indices = @transform_3, window_bounds = array<i64: 1, 8>}, {pipeline_mode = #tpu.pipeline_mode<synchronous>, transform_indices = @transform_4, window_bounds = array<i64: 72, 8>}, {pipeline_mode = #tpu.pipeline_mode<synchronous>, transform_indices = @transform_5, window_bounds = array<i64: 1, 8>}, {pipeline_mode = #tpu.pipeline_mode<synchronous>, transform_indices = @transform_6, window_bounds = array<i64: 8, 4>}, {pipeline_mode = #tpu.pipeline_mode<synchronous>, transform_indices = @transform_7, window_bounds = array<i64: 1, 4>}, {transform_indices = @transform_8, window_bounds = array<i64: 1, 1, 8, 16, 4>}, {transform_indices = @transform_9, window_bounds = array<i64: 1, 1, 1, 4>}, {transform_indices = @transform_10, window_bounds = array<i64: 1, 1, 1, 4>}]} {
    %c0 = arith.constant 0 : index
    %c0_0 = arith.constant 0 : index
    %c0_1 = arith.constant 0 : index
    %c0_2 = arith.constant 0 : index
    %c0_3 = arith.constant 0 : index
    %0 = vector.load %arg2[%c0, %c0_0, %c0_1, %c0_2, %c0_3] : memref<1x1x12x18x4xf32, #tpu.memory_space<vmem>>, vector<1x1x12x18x4xf32>
    %1 = vector.shape_cast %0 : vector<1x1x12x18x4xf32> to vector<12x18x4xf32>
    %2 = vector.extract_strided_slice %1 {offsets = [0, 0, 0], sizes = [10, 16, 4], strides = [1, 1, 1]} : vector<12x18x4xf32> to vector<10x16x4xf32>
    %3 = vector.extract_strided_slice %1 {offsets = [0, 1, 0], sizes = [10, 16, 4], strides = [1, 1, 1]} : vector<12x18x4xf32> to vector<10x16x4xf32>
    %4 = vector.extract_strided_slice %1 {offsets = [0, 2, 0], sizes = [10, 16, 4], strides = [1, 1, 1]} : vector<12x18x4xf32> to vector<10x16x4xf32>
    %5 = tpu.concatenate %2, %3, %4 in 2 : vector<10x16x4xf32>, vector<10x16x4xf32>, vector<10x16x4xf32> -> vector<10x16x12xf32>
    %6 = vector.shape_cast %5 : vector<10x16x12xf32> to vector<160x12xf32>
    %c0_4 = arith.constant 0 : index
    %c0_5 = arith.constant 0 : index
    %7 = vector.load %arg4[%c0_4, %c0_5] : memref<36x8xf32, #tpu.memory_space<vmem>>, vector<12x8xf32>
    %cst = arith.constant dense<0.000000e+00> : vector<160x8xf32>
    %8 = tpu.matmul %6, %7, %cst {dimension_numbers = #tpu.dot_dimension_numbers<[1], [0], [0], [1], [0, 0, 1, 1], [], []>} : vector<160x12xf32>, vector<12x8xf32>, vector<160x8xf32> -> vector<160x8xf32>
    %9 = vector.extract_strided_slice %1 {offsets = [1, 0, 0], sizes = [10, 16, 4], strides = [1, 1, 1]} : vector<12x18x4xf32> to vector<10x16x4xf32>
    %10 = vector.extract_strided_slice %1 {offsets = [1, 1, 0], sizes = [10, 16, 4], strides = [1, 1, 1]} : vector<12x18x4xf32> to vector<10x16x4xf32>
    %11 = vector.extract_strided_slice %1 {offsets = [1, 2, 0], sizes = [10, 16, 4], strides = [1, 1, 1]} : vector<12x18x4xf32> to vector<10x16x4xf32>
    %12 = tpu.concatenate %9, %10, %11 in 2 : vector<10x16x4xf32>, vector<10x16x4xf32>, vector<10x16x4xf32> -> vector<10x16x12xf32>
    %13 = vector.shape_cast %12 : vector<10x16x12xf32> to vector<160x12xf32>
    %c12 = arith.constant 12 : index
    %c0_6 = arith.constant 0 : index
    %14 = vector.load %arg4[%c12, %c0_6] : memref<36x8xf32, #tpu.memory_space<vmem>>, vector<12x8xf32>
    %cst_7 = arith.constant dense<0.000000e+00> : vector<160x8xf32>
    %15 = tpu.matmul %13, %14, %cst_7 {dimension_numbers = #tpu.dot_dimension_numbers<[1], [0], [0], [1], [0, 0, 1, 1], [], []>} : vector<160x12xf32>, vector<12x8xf32>, vector<160x8xf32> -> vector<160x8xf32>
    %16 = arith.addf %8, %15 : vector<160x8xf32>
    %17 = vector.extract_strided_slice %1 {offsets = [2, 0, 0], sizes = [10, 16, 4], strides = [1, 1, 1]} : vector<12x18x4xf32> to vector<10x16x4xf32>
    %18 = vector.extract_strided_slice %1 {offsets = [2, 1, 0], sizes = [10, 16, 4], strides = [1, 1, 1]} : vector<12x18x4xf32> to vector<10x16x4xf32>
    %19 = vector.extract_strided_slice %1 {offsets = [2, 2, 0], sizes = [10, 16, 4], strides = [1, 1, 1]} : vector<12x18x4xf32> to vector<10x16x4xf32>
    %20 = tpu.concatenate %17, %18, %19 in 2 : vector<10x16x4xf32>, vector<10x16x4xf32>, vector<10x16x4xf32> -> vector<10x16x12xf32>
    %21 = vector.shape_cast %20 : vector<10x16x12xf32> to vector<160x12xf32>
    %c24 = arith.constant 24 : index
    %c0_8 = arith.constant 0 : index
    %22 = vector.load %arg4[%c24, %c0_8] : memref<36x8xf32, #tpu.memory_space<vmem>>, vector<12x8xf32>
    %cst_9 = arith.constant dense<0.000000e+00> : vector<160x8xf32>
    %23 = tpu.matmul %21, %22, %cst_9 {dimension_numbers = #tpu.dot_dimension_numbers<[1], [0], [0], [1], [0, 0, 1, 1], [], []>} : vector<160x12xf32>, vector<12x8xf32>, vector<160x8xf32> -> vector<160x8xf32>
    %24 = arith.addf %16, %23 : vector<160x8xf32>
    %c0_10 = arith.constant 0 : index
    %c0_11 = arith.constant 0 : index
    %25 = vector.load %arg5[%c0_10, %c0_11] : memref<1x8xf32, #tpu.memory_space<vmem>>, vector<1x8xf32>
    %26 = vector.broadcast %25 : vector<1x8xf32> to vector<160x8xf32>
    %27 = arith.addf %24, %26 : vector<160x8xf32>
    %cst_12 = arith.constant 0.000000e+00 : f32
    %28 = vector.broadcast %cst_12 : f32 to vector<160x8xf32>
    %29 = arith.cmpf ogt, %27, %28 : vector<160x8xf32>
    %cst_13 = arith.constant 0.00999999977 : f32
    %30 = vector.broadcast %cst_13 : f32 to vector<160x8xf32>
    %31 = arith.mulf %30, %27 : vector<160x8xf32>
    %32 = arith.select %29, %27, %31 : vector<160x8xi1>, vector<160x8xf32>
    %33 = vector.shape_cast %32 : vector<160x8xf32> to vector<10x16x8xf32>
    %c0_i32 = arith.constant 0 : i32
    %34 = arith.cmpi sgt, %arg1, %c0_i32 : i32
    %35 = arith.extui %34 : i1 to i32
    %36 = arith.sitofp %35 : i32 to f32
    %c1_i32 = arith.constant 1 : i32
    %37 = arith.cmpi slt, %arg1, %c1_i32 : i32
    %38 = arith.extui %37 : i1 to i32
    %39 = arith.sitofp %38 : i32 to f32
    %40 = vector.extract_strided_slice %33 {offsets = [0, 0, 0], sizes = [1, 16, 8], strides = [1, 1, 1]} : vector<10x16x8xf32> to vector<1x16x8xf32>
    %41 = vector.broadcast %36 : f32 to vector<1x16x8xf32>
    %42 = arith.mulf %40, %41 : vector<1x16x8xf32>
    %43 = vector.extract_strided_slice %33 {offsets = [1, 0, 0], sizes = [8, 16, 8], strides = [1, 1, 1]} : vector<10x16x8xf32> to vector<8x16x8xf32>
    %44 = vector.extract_strided_slice %33 {offsets = [9, 0, 0], sizes = [1, 16, 8], strides = [1, 1, 1]} : vector<10x16x8xf32> to vector<1x16x8xf32>
    %45 = vector.broadcast %39 : f32 to vector<1x16x8xf32>
    %46 = arith.mulf %44, %45 : vector<1x16x8xf32>
    %47 = tpu.concatenate %42, %43, %46 in 0 : vector<1x16x8xf32>, vector<8x16x8xf32>, vector<1x16x8xf32> -> vector<10x16x8xf32>
    %cst_14 = arith.constant 0.000000e+00 : f32
    %48 = vector.broadcast %cst_14 : f32 to vector<10x1x8xf32>
    %49 = tpu.concatenate %48, %47, %48 in 1 : vector<10x1x8xf32>, vector<10x16x8xf32>, vector<10x1x8xf32> -> vector<10x18x8xf32>
    %50 = vector.extract_strided_slice %49 {offsets = [0, 0, 0], sizes = [8, 16, 8], strides = [1, 1, 1]} : vector<10x18x8xf32> to vector<8x16x8xf32>
    %51 = vector.extract_strided_slice %49 {offsets = [0, 1, 0], sizes = [8, 16, 8], strides = [1, 1, 1]} : vector<10x18x8xf32> to vector<8x16x8xf32>
    %52 = vector.extract_strided_slice %49 {offsets = [0, 2, 0], sizes = [8, 16, 8], strides = [1, 1, 1]} : vector<10x18x8xf32> to vector<8x16x8xf32>
    %53 = tpu.concatenate %50, %51, %52 in 2 : vector<8x16x8xf32>, vector<8x16x8xf32>, vector<8x16x8xf32> -> vector<8x16x24xf32>
    %54 = vector.shape_cast %53 : vector<8x16x24xf32> to vector<128x24xf32>
    %c0_15 = arith.constant 0 : index
    %c0_16 = arith.constant 0 : index
    %55 = vector.load %arg6[%c0_15, %c0_16] : memref<72x8xf32, #tpu.memory_space<vmem>>, vector<24x8xf32>
    %cst_17 = arith.constant dense<0.000000e+00> : vector<128x8xf32>
    %56 = tpu.matmul %54, %55, %cst_17 {dimension_numbers = #tpu.dot_dimension_numbers<[1], [0], [0], [1], [0, 0, 1, 1], [], []>} : vector<128x24xf32>, vector<24x8xf32>, vector<128x8xf32> -> vector<128x8xf32>
    %57 = vector.extract_strided_slice %49 {offsets = [1, 0, 0], sizes = [8, 16, 8], strides = [1, 1, 1]} : vector<10x18x8xf32> to vector<8x16x8xf32>
    %58 = vector.extract_strided_slice %49 {offsets = [1, 1, 0], sizes = [8, 16, 8], strides = [1, 1, 1]} : vector<10x18x8xf32> to vector<8x16x8xf32>
    %59 = vector.extract_strided_slice %49 {offsets = [1, 2, 0], sizes = [8, 16, 8], strides = [1, 1, 1]} : vector<10x18x8xf32> to vector<8x16x8xf32>
    %60 = tpu.concatenate %57, %58, %59 in 2 : vector<8x16x8xf32>, vector<8x16x8xf32>, vector<8x16x8xf32> -> vector<8x16x24xf32>
    %61 = vector.shape_cast %60 : vector<8x16x24xf32> to vector<128x24xf32>
    %c24_18 = arith.constant 24 : index
    %c0_19 = arith.constant 0 : index
    %62 = vector.load %arg6[%c24_18, %c0_19] : memref<72x8xf32, #tpu.memory_space<vmem>>, vector<24x8xf32>
    %cst_20 = arith.constant dense<0.000000e+00> : vector<128x8xf32>
    %63 = tpu.matmul %61, %62, %cst_20 {dimension_numbers = #tpu.dot_dimension_numbers<[1], [0], [0], [1], [0, 0, 1, 1], [], []>} : vector<128x24xf32>, vector<24x8xf32>, vector<128x8xf32> -> vector<128x8xf32>
    %64 = arith.addf %56, %63 : vector<128x8xf32>
    %65 = vector.extract_strided_slice %49 {offsets = [2, 0, 0], sizes = [8, 16, 8], strides = [1, 1, 1]} : vector<10x18x8xf32> to vector<8x16x8xf32>
    %66 = vector.extract_strided_slice %49 {offsets = [2, 1, 0], sizes = [8, 16, 8], strides = [1, 1, 1]} : vector<10x18x8xf32> to vector<8x16x8xf32>
    %67 = vector.extract_strided_slice %49 {offsets = [2, 2, 0], sizes = [8, 16, 8], strides = [1, 1, 1]} : vector<10x18x8xf32> to vector<8x16x8xf32>
    %68 = tpu.concatenate %65, %66, %67 in 2 : vector<8x16x8xf32>, vector<8x16x8xf32>, vector<8x16x8xf32> -> vector<8x16x24xf32>
    %69 = vector.shape_cast %68 : vector<8x16x24xf32> to vector<128x24xf32>
    %c48 = arith.constant 48 : index
    %c0_21 = arith.constant 0 : index
    %70 = vector.load %arg6[%c48, %c0_21] : memref<72x8xf32, #tpu.memory_space<vmem>>, vector<24x8xf32>
    %cst_22 = arith.constant dense<0.000000e+00> : vector<128x8xf32>
    %71 = tpu.matmul %69, %70, %cst_22 {dimension_numbers = #tpu.dot_dimension_numbers<[1], [0], [0], [1], [0, 0, 1, 1], [], []>} : vector<128x24xf32>, vector<24x8xf32>, vector<128x8xf32> -> vector<128x8xf32>
    %72 = arith.addf %64, %71 : vector<128x8xf32>
    %c0_23 = arith.constant 0 : index
    %c0_24 = arith.constant 0 : index
    %73 = vector.load %arg7[%c0_23, %c0_24] : memref<1x8xf32, #tpu.memory_space<vmem>>, vector<1x8xf32>
    %74 = vector.broadcast %73 : vector<1x8xf32> to vector<128x8xf32>
    %75 = arith.addf %72, %74 : vector<128x8xf32>
    %cst_25 = arith.constant 0.000000e+00 : f32
    %76 = vector.broadcast %cst_25 : f32 to vector<128x8xf32>
    %77 = arith.cmpf ogt, %75, %76 : vector<128x8xf32>
    %cst_26 = arith.constant 0.00999999977 : f32
    %78 = vector.broadcast %cst_26 : f32 to vector<128x8xf32>
    %79 = arith.mulf %78, %75 : vector<128x8xf32>
    %80 = arith.select %77, %75, %79 : vector<128x8xi1>, vector<128x8xf32>
    %c0_27 = arith.constant 0 : index
    %c0_28 = arith.constant 0 : index
    %c0_29 = arith.constant 0 : index
    %c0_30 = arith.constant 0 : index
    %c0_31 = arith.constant 0 : index
    %81 = vector.load %arg3[%c0_27, %c0_28, %c0_29, %c0_30, %c0_31] : memref<1x1x8x16x4xf32, #tpu.memory_space<vmem>>, vector<1x1x8x16x4xf32>
    %82 = vector.shape_cast %81 : vector<1x1x8x16x4xf32> to vector<8x16x4xf32>
    %83 = vector.shape_cast %82 : vector<8x16x4xf32> to vector<128x4xf32>
    %c0_32 = arith.constant 0 : index
    %c0_33 = arith.constant 0 : index
    %84 = vector.load %arg8[%c0_32, %c0_33] : memref<8x4xf32, #tpu.memory_space<vmem>>, vector<8x4xf32>
    %cst_34 = arith.constant dense<0.000000e+00> : vector<128x4xf32>
    %85 = tpu.matmul %80, %84, %cst_34 {dimension_numbers = #tpu.dot_dimension_numbers<[1], [0], [0], [1], [0, 0, 1, 1], [], []>} : vector<128x8xf32>, vector<8x4xf32>, vector<128x4xf32> -> vector<128x4xf32>
    %c0_35 = arith.constant 0 : index
    %c0_36 = arith.constant 0 : index
    %86 = vector.load %arg9[%c0_35, %c0_36] : memref<1x4xf32, #tpu.memory_space<vmem>>, vector<1x4xf32>
    %87 = vector.broadcast %86 : vector<1x4xf32> to vector<128x4xf32>
    %88 = arith.addf %85, %87 : vector<128x4xf32>
    %89 = arith.addf %88, %83 : vector<128x4xf32>
    %cst_37 = arith.constant dense<0.000000e+00> : vector<4xf32>
    %90 = vector.multi_reduction <add>, %89, %cst_37 [0] : vector<128x4xf32> to vector<4xf32>
    %91 = vector.shape_cast %90 : vector<4xf32> to vector<1x4xf32>
    %cst_38 = arith.constant 7.812500e-03 : f32
    %92 = vector.broadcast %cst_38 : f32 to vector<1x4xf32>
    %93 = arith.mulf %91, %92 : vector<1x4xf32>
    %94 = vector.broadcast %93 : vector<1x4xf32> to vector<128x4xf32>
    %95 = arith.subf %89, %94 : vector<128x4xf32>
    %96 = arith.mulf %95, %95 : vector<128x4xf32>
    %cst_39 = arith.constant dense<0.000000e+00> : vector<4xf32>
    %97 = vector.multi_reduction <add>, %96, %cst_39 [0] : vector<128x4xf32> to vector<4xf32>
    %98 = vector.shape_cast %97 : vector<4xf32> to vector<1x4xf32>
    %99 = vector.shape_cast %89 : vector<128x4xf32> to vector<8x16x4xf32>
    %c0_40 = arith.constant 0 : index
    %c0_41 = arith.constant 0 : index
    %c0_42 = arith.constant 0 : index
    %c0_43 = arith.constant 0 : index
    %c0_44 = arith.constant 0 : index
    %100 = vector.load %arg10[%c0_40, %c0_41, %c0_42, %c0_43, %c0_44] : memref<1x1x8x16x4xf32, #tpu.memory_space<vmem>>, vector<1x1x8x16x4xf32>
    %101 = vector.shape_cast %100 : vector<1x1x8x16x4xf32> to vector<8x16x4xf32>
    %102 = vector.shape_cast %99 : vector<8x16x4xf32> to vector<1x1x8x16x4xf32>
    tpu.vector_store %arg10[%c0_40, %c0_41, %c0_42, %c0_43, %c0_44], %102 {strides = array<i32>} : memref<1x1x8x16x4xf32, #tpu.memory_space<vmem>>, vector<1x1x8x16x4xf32>,
    %c0_45 = arith.constant 0 : index
    %c0_46 = arith.constant 0 : index
    %c0_47 = arith.constant 0 : index
    %c0_48 = arith.constant 0 : index
    %103 = vector.load %arg11[%c0_45, %c0_46, %c0_47, %c0_48] : memref<1x1x1x4xf32, #tpu.memory_space<vmem>>, vector<1x1x1x4xf32>
    %104 = vector.shape_cast %103 : vector<1x1x1x4xf32> to vector<1x4xf32>
    %105 = vector.shape_cast %91 : vector<1x4xf32> to vector<1x1x1x4xf32>
    tpu.vector_store %arg11[%c0_45, %c0_46, %c0_47, %c0_48], %105 {strides = array<i32>} : memref<1x1x1x4xf32, #tpu.memory_space<vmem>>, vector<1x1x1x4xf32>,
    %c0_49 = arith.constant 0 : index
    %c0_50 = arith.constant 0 : index
    %c0_51 = arith.constant 0 : index
    %c0_52 = arith.constant 0 : index
    %106 = vector.load %arg12[%c0_49, %c0_50, %c0_51, %c0_52] : memref<1x1x1x4xf32, #tpu.memory_space<vmem>>, vector<1x1x1x4xf32>
    %107 = vector.shape_cast %106 : vector<1x1x1x4xf32> to vector<1x4xf32>
    %108 = vector.shape_cast %98 : vector<1x4xf32> to vector<1x1x1x4xf32>
    tpu.vector_store %arg12[%c0_49, %c0_50, %c0_51, %c0_52], %108 {strides = array<i32>} : memref<1x1x1x4xf32, #tpu.memory_space<vmem>>, vector<1x1x1x4xf32>,
    return
  }
  func.func @transform_0(%arg0: i32, %arg1: i32) -> (i32, i32, i32, i32, i32) {
    %c0_i32 = arith.constant 0 : i32
    %c0_i32_0 = arith.constant 0 : i32
    %c0_i32_1 = arith.constant 0 : i32
    %c0_i32_2 = arith.constant 0 : i32
    return %arg0, %arg1, %c0_i32, %c0_i32_0, %c0_i32_1 : i32, i32, i32, i32, i32
  }
  func.func @transform_1(%arg0: i32, %arg1: i32) -> (i32, i32, i32, i32, i32) {
    %c0_i32 = arith.constant 0 : i32
    %c0_i32_0 = arith.constant 0 : i32
    %c0_i32_1 = arith.constant 0 : i32
    %c0_i32_2 = arith.constant 0 : i32
    return %arg0, %arg1, %c0_i32, %c0_i32_0, %c0_i32_1 : i32, i32, i32, i32, i32
  }
  func.func @transform_2(%arg0: i32, %arg1: i32) -> (i32, i32) {
    %c0_i32 = arith.constant 0 : i32
    %c0_i32_0 = arith.constant 0 : i32
    %c0_i32_1 = arith.constant 0 : i32
    return %c0_i32, %c0_i32_0 : i32, i32
  }
  func.func @transform_3(%arg0: i32, %arg1: i32) -> (i32, i32) {
    %c0_i32 = arith.constant 0 : i32
    %c0_i32_0 = arith.constant 0 : i32
    %c0_i32_1 = arith.constant 0 : i32
    return %c0_i32, %c0_i32_0 : i32, i32
  }
  func.func @transform_4(%arg0: i32, %arg1: i32) -> (i32, i32) {
    %c0_i32 = arith.constant 0 : i32
    %c0_i32_0 = arith.constant 0 : i32
    %c0_i32_1 = arith.constant 0 : i32
    return %c0_i32, %c0_i32_0 : i32, i32
  }
  func.func @transform_5(%arg0: i32, %arg1: i32) -> (i32, i32) {
    %c0_i32 = arith.constant 0 : i32
    %c0_i32_0 = arith.constant 0 : i32
    %c0_i32_1 = arith.constant 0 : i32
    return %c0_i32, %c0_i32_0 : i32, i32
  }
  func.func @transform_6(%arg0: i32, %arg1: i32) -> (i32, i32) {
    %c0_i32 = arith.constant 0 : i32
    %c0_i32_0 = arith.constant 0 : i32
    %c0_i32_1 = arith.constant 0 : i32
    return %c0_i32, %c0_i32_0 : i32, i32
  }
  func.func @transform_7(%arg0: i32, %arg1: i32) -> (i32, i32) {
    %c0_i32 = arith.constant 0 : i32
    %c0_i32_0 = arith.constant 0 : i32
    %c0_i32_1 = arith.constant 0 : i32
    return %c0_i32, %c0_i32_0 : i32, i32
  }
  func.func @transform_8(%arg0: i32, %arg1: i32) -> (i32, i32, i32, i32, i32) {
    %c0_i32 = arith.constant 0 : i32
    %c0_i32_0 = arith.constant 0 : i32
    %c0_i32_1 = arith.constant 0 : i32
    %c0_i32_2 = arith.constant 0 : i32
    return %arg0, %arg1, %c0_i32, %c0_i32_0, %c0_i32_1 : i32, i32, i32, i32, i32
  }
  func.func @transform_9(%arg0: i32, %arg1: i32) -> (i32, i32, i32, i32) {
    %c0_i32 = arith.constant 0 : i32
    %c0_i32_0 = arith.constant 0 : i32
    %c0_i32_1 = arith.constant 0 : i32
    return %arg0, %arg1, %c0_i32, %c0_i32_0 : i32, i32, i32, i32
  }
  func.func @transform_10(%arg0: i32, %arg1: i32) -> (i32, i32, i32, i32) {
    %c0_i32 = arith.constant 0 : i32
    %c0_i32_0 = arith.constant 0 : i32
    %c0_i32_1 = arith.constant 0 : i32
    return %arg0, %arg1, %c0_i32, %c0_i32_0 : i32, i32, i32, i32
  }
}

</mosaic_0001>

<bundles_post_ra>
// kernel: resblock_forward.3
= control target key start
LH: loop header
LB: loop body
LE: loop exit
PB: predicated region body
PF: predicated region fallthrough
CT: control target
= control target key end

     0   :  { %s538_s12 = smov 0   ;;  %s540_s13 = smov 0   ;;  %s686_s0 = inlined_call_operand.vmem [shape: f32[2,2,8,16,4], index: 0, kind: input, shape index: {}]   ;;  %s687_s1 = inlined_call_operand.vmem [shape: f32[1,4], index: 1, kind: input, shape index: {}]   ;;  %s688_s2 = inlined_call_operand.vmem [shape: f32[1,4], index: 2, kind: input, shape index: {}]   ;;  %s689_s3 = inlined_call_operand.vmem [shape: f32[2,2,8,16,4], index: 3, kind: output, shape index: {}]  }
   0x1   :  { %s542_s14 = smov 0   ;;  %s544_s15 = smov 0  }
   0x2   :  { %s546_s16 = smov 0  }
   0x3 LB: > { %s22_s17 = sadd.s32 1, %s508_s14  ;;  %s25_s18 = sadd.s32 1, %s512_s15  ;;  %s516_s16 = sphi %s546_s16, %s13_s16   ;;  %s512_s15 = sphi %s544_s15, %s693_s15   ;;  %s508_s14 = sphi %s542_s14, %s692_s14   ;;  %s504_s13 = sphi %s540_s13, %s691_s13   ;;  %s500_s12 = sphi %s538_s12, %s690_s12  }
   0x4   : > { %p23_p0 = scmp.ge.s32.totalorder %s22_s17, 2  ;;  %p427_p1 = scmp.ge.s32.totalorder %s516_s16, 1 }
   0x5   : > { %p157_p2 = scmp.lt.s32.totalorder %s516_s16, 5 }
   0x6   : > { %s695_s17 = smov (%p23_p0, %s22_s17), 0  ;;  %s697_s18 = smov (!%p23_p0, %s25_s18), %s512_s15 }
   0x7   : > { %p158_p3 = pnand %p427_p1, %p157_p2  ;;  %p27_p4 = scmp.ge.s32.totalorder %s697_s18, 2 }
   0x8   : > { %p189_p5 = scmp.lt.s32.totalorder (!%p158_p3), %s504_s13, 1  ;;  %p191_p6 = scmp.lt.s32.totalorder (!%p158_p3), %s500_s12, 1 }
   0x9   : > { %s699_s18 = smov (%p27_p4, %s697_s18), 0  ;;  %161 = sbr.rel (%p158_p3) target bundleno = 45 (0x2d), region = 32 }
   0xe   : > { %s701_s13 = smov (!%p189_p5, %s504_s13), 1  ;;  %s703_s12 = smov (!%p191_p6, %s500_s12), 1  ;;  %v573_v0 = vld [vmem:[%s687_s1] ss:$0 sm:$0xff]  ;;  %vm311_vm0 = vcmask 31744  }
   0xf   : > { %s429_s19 = sshll.u32 %s701_s13, 5  ;;  %s428_s20 = sshll.u32 %s703_s12, 4  ;;  %v584_v1 = vld [vmem:[%s688_s2] ss:$0 sm:$0xff] }
  0x10   : > { %s568_s21 = sadd.s32 %s429_s19, %s428_s20 }
  0x11   : > { %s430_s24 = sshll.u32 %s568_s21, 3 }
  0x12   : > { %s579_s27 = scalar_lea.vmem %s686_s0, %s430_s24  ;;  %s612_s5 = scalar_lea.vmem %s689_s3, %s430_s24 }
  0x13   : > { %v207_v2 = vld [vmem:[%s579_s27] sm:$0xff]  ;;  %v208_v3 = vld [vmem:[%s579_s27 + $0x8] sm:$0xff]  ;;  %v209_v4 = vld [vmem:[%s579_s27 + $0x10] sm:$0xff] }
  0x14   : > { %v227_v5 = vmul.f32 %v573_v0, %v207_v2  ;;  %v228_v6 = vmul.f32 %v573_v0, %v208_v3  ;;  %v229_v7 = vmul.f32 %v573_v0, %v209_v4  ;;  %v210_v8 = vld [vmem:[%s579_s27 + $0x18] sm:$0xff]  ;;  %v211_v9 = vld [vmem:[%s579_s27 + $0x20] sm:$0xff]  ;;  %v212_v10 = vld [vmem:[%s579_s27 + $0x28] sm:$0xff] }
  0x15   : > { %v230_v11 = vmul.f32 %v573_v0, %v210_v8  ;;  %v231_v12 = vmul.f32 %v573_v0, %v211_v9  ;;  %v232_v13 = vmul.f32 %v573_v0, %v212_v10  ;;  %v213_v14 = vld [vmem:[%s579_s27 + $0x30] sm:$0xff]  ;;  %v214_v15 = vld [vmem:[%s579_s27 + $0x38] sm:$0xff]  ;;  %v215_v24 = vld [vmem:[%s579_s27 + $0x40] sm:$0xff] }
  0x16   : > { %v247_v16 = vadd.f32 %v584_v1, %v227_v5  ;;  %v248_v17 = vadd.f32 %v584_v1, %v228_v6  ;;  %v249_v18 = vadd.f32 %v584_v1, %v229_v7  ;;  %v233_v19 = vmul.f32 %v573_v0, %v213_v14  ;;  %v216_v32 = vld [vmem:[%s579_s27 + $0x48] sm:$0xff]  ;;  %v217_v33 = vld [vmem:[%s579_s27 + $0x50] sm:$0xff]  ;;  %v218_v34 = vld [vmem:[%s579_s27 + $0x58] sm:$0xff] }
  0x17   : > { %v250_v20 = vadd.f32 %v584_v1, %v230_v11  ;;  %v251_v21 = vadd.f32 %v584_v1, %v231_v12  ;;  %v252_v22 = vadd.f32 %v584_v1, %v232_v13  ;;  %v234_v23 = vmul.f32 %v573_v0, %v214_v15  ;;  %v219_v46 = vld [vmem:[%s579_s27 + $0x60] sm:$0xff]  ;;  %v220_v56 = vld [vmem:[%s579_s27 + $0x68] sm:$0xff]  ;;  %v221_v57 = vld [vmem:[%s579_s27 + $0x70] sm:$0xff] }
  0x18   : > { %vm263_vm1 = vcmp.gt.f32.partialorder %v247_v16, 0.0  ;;  %v279_v25 = vmul.f32 0.01, %v247_v16  ;;  %vm264_vm2 = vcmp.gt.f32.partialorder %v248_v17, 0.0  ;;  %v280_v26 = vmul.f32 0.01, %v248_v17 }
  0x19   : > { %vm265_vm3 = vcmp.gt.f32.partialorder %v249_v18, 0.0  ;;  %v281_v27 = vmul.f32 0.01, %v249_v18  ;;  %vm266_vm4 = vcmp.gt.f32.partialorder %v250_v20, 0.0  ;;  %v282_v28 = vmul.f32 0.01, %v250_v20 }
  0x1a   : > { %v295_v29 = vsel %vm263_vm1, %v247_v16, %v279_v25  ;;  %v296_v30 = vsel %vm264_vm2, %v248_v17, %v280_v26  ;;  %vm267_vm5 = vcmp.gt.f32.partialorder %v251_v21, 0.0  ;;  %v283_v31 = vmul.f32 0.01, %v251_v21  ;;  %v222_v60 = vld [vmem:[%s579_s27 + $0x78] sm:$0xff] }
  0x1b   : > { %312 = vst.msk [vmem:[%s612_s5] sm:$0xff] %vm311_vm0, %v295_v29  ;;  %v297_v35 = vsel %vm265_vm3, %v249_v18, %v281_v27  ;;  %v298_v36 = vsel %vm266_vm4, %v250_v20, %v282_v28  ;;  %vm268_vm6 = vcmp.gt.f32.partialorder %v252_v22, 0.0  ;;  %v284_v37 = vmul.f32 0.01, %v252_v22 }
  0x1c   : > { %313 = vst.msk [vmem:[%s612_s5 + $0x8] sm:$0xff] %vm311_vm0, %v296_v30  ;;  %v299_v38 = vsel %vm267_vm5, %v251_v21, %v283_v31  ;;  %v253_v39 = vadd.f32 %v584_v1, %v233_v19  ;;  %v254_v40 = vadd.f32 %v584_v1, %v234_v23  ;;  %v235_v41 = vmul.f32 %v573_v0, %v215_v24 }
  0x1d   : > { %314 = vst.msk [vmem:[%s612_s5 + $0x10] sm:$0xff] %vm311_vm0, %v297_v35  ;;  %v300_v42 = vsel %vm268_vm6, %v252_v22, %v284_v37  ;;  %v236_v43 = vmul.f32 %v573_v0, %v216_v32  ;;  %v237_v44 = vmul.f32 %v573_v0, %v217_v33  ;;  %v238_v45 = vmul.f32 %v573_v0, %v218_v34 }
  0x1e   : > { %315 = vst.msk [vmem:[%s612_s5 + $0x18] sm:$0xff] %vm311_vm0, %v298_v36  ;;  %vm269_vm7 = vcmp.gt.f32.partialorder %v253_v39, 0.0  ;;  %v285_v47 = vmul.f32 0.01, %v253_v39  ;;  %vm270_vm8 = vcmp.gt.f32.partialorder %v254_v40, 0.0  ;;  %v255_v48 = vadd.f32 %v584_v1, %v235_v41 }
  0x1f   : > { %316 = vst.msk [vmem:[%s612_s5 + $0x20] sm:$0xff] %vm311_vm0, %v299_v38  ;;  %v286_v49 = vmul.f32 0.01, %v254_v40  ;;  %v256_v50 = vadd.f32 %v584_v1, %v236_v43  ;;  %v257_v51 = vadd.f32 %v584_v1, %v237_v44  ;;  %v258_v52 = vadd.f32 %v584_v1, %v238_v45 }
  0x20   : > { %317 = vst.msk [vmem:[%s612_s5 + $0x28] sm:$0xff] %vm311_vm0, %v300_v42  ;;  %v301_v53 = vsel %vm269_vm7, %v253_v39, %v285_v47  ;;  %vm271_vm9 = vcmp.gt.f32.partialorder %v255_v48, 0.0  ;;  %v287_v54 = vmul.f32 0.01, %v255_v48  ;;  %v239_v55 = vmul.f32 %v573_v0, %v219_v46 }
  0x21   : > { %318 = vst.msk [vmem:[%s612_s5 + $0x30] sm:$0xff] %vm311_vm0, %v301_v53  ;;  %v302_v58 = vsel %vm270_vm8, %v254_v40, %v286_v49  ;;  %vm272_vm10 = vcmp.gt.f32.partialorder %v256_v50, 0.0  ;;  %v288_v59 = vmul.f32 0.01, %v256_v50  ;;  %vm273_vm11 = vcmp.gt.f32.partialorder %v257_v51, 0.0 }
  0x22   : > { %319 = vst.msk [vmem:[%s612_s5 + $0x38] sm:$0xff] %vm311_vm0, %v302_v58  ;;  %v303_v61 = vsel %vm271_vm9, %v255_v48, %v287_v54  ;;  %v289_v62 = vmul.f32 0.01, %v257_v51  ;;  %vm274_vm12 = vcmp.gt.f32.partialorder %v258_v52, 0.0  ;;  %v290_v63 = vmul.f32 0.01, %v258_v52 }
  0x23   : > { %320 = vst.msk [vmem:[%s612_s5 + $0x40] sm:$0xff] %vm311_vm0, %v303_v61  ;;  %v304_v2 = vsel %vm272_vm10, %v256_v50, %v288_v59  ;;  %v259_v3 = vadd.f32 %v584_v1, %v239_v55  ;;  %v240_v4 = vmul.f32 %v573_v0, %v220_v56  ;;  %v241_v5 = vmul.f32 %v573_v0, %v221_v57 }
  0x24   : > { %321 = vst.msk [vmem:[%s612_s5 + $0x48] sm:$0xff] %vm311_vm0, %v304_v2  ;;  %v305_v6 = vsel %vm273_vm11, %v257_v51, %v289_v62  ;;  %v306_v7 = vsel %vm274_vm12, %v258_v52, %v290_v63  ;;  %v242_v8 = vmul.f32 %v573_v0, %v222_v60 }
  0x25   : > { %322 = vst.msk [vmem:[%s612_s5 + $0x50] sm:$0xff] %vm311_vm0, %v305_v6  ;;  %vm275_vm13 = vcmp.gt.f32.partialorder %v259_v3, 0.0  ;;  %v291_v9 = vmul.f32 0.01, %v259_v3  ;;  %v260_v10 = vadd.f32 %v584_v1, %v240_v4  ;;  %v261_v11 = vadd.f32 %v584_v1, %v241_v5 }
  0x26   : > { %323 = vst.msk [vmem:[%s612_s5 + $0x58] sm:$0xff] %vm311_vm0, %v306_v7  ;;  %v262_v12 = vadd.f32 %v584_v1, %v242_v8 }
  0x27   : > { %v307_v13 = vsel %vm275_vm13, %v259_v3, %v291_v9  ;;  %vm276_vm14 = vcmp.gt.f32.partialorder %v260_v10, 0.0  ;;  %v292_v14 = vmul.f32 0.01, %v260_v10  ;;  %vm277_vm15 = vcmp.gt.f32.partialorder %v261_v11, 0.0 }
  0x28   : > { %324 = vst.msk [vmem:[%s612_s5 + $0x60] sm:$0xff] %vm311_vm0, %v307_v13  ;;  %v293_v0 = vmul.f32 0.01, %v261_v11  ;;  %vm278_vm1 = vcmp.gt.f32.partialorder %v262_v12, 0.0  ;;  %v294_v15 = vmul.f32 0.01, %v262_v12 }
  0x29   : > { %v308_v16 = vsel %vm276_vm14, %v260_v10, %v292_v14 }
  0x2a   : > { %325 = vst.msk [vmem:[%s612_s5 + $0x68] sm:$0xff] %vm311_vm0, %v308_v16  ;;  %v309_v17 = vsel %vm277_vm15, %v261_v11, %v293_v0  ;;  %v310_v18 = vsel %vm278_vm1, %v262_v12, %v294_v15 }
  0x2b   : > { %326 = vst.msk [vmem:[%s612_s5 + $0x70] sm:$0xff] %vm311_vm0, %v309_v17 }
  0x2c   : > { %327 = vst.msk [vmem:[%s612_s5 + $0x78] sm:$0xff] %vm311_vm0, %v310_v18 }
  0x2d PF: > { %s13_s16 = sadd.s32 1, %s516_s16   ;;  %s690_s12 = smov %s508_s14 }
  0x2e   : > { %p10_p7 = scmp.ge.s32.totalorder %s13_s16, 6   ;;  %s691_s13 = smov %s512_s15 }
  0x2f   : > { %s692_s14 = smov %s695_s17  ;;  %s693_s15 = smov %s699_s18 }
  0x30   :  { %12 = sbr.rel (!%p10_p7) target bundleno = 3 (0x3), region = 62 }

// kernel: resblock_forward.2
= control target key start
LH: loop header
LB: loop body
LE: loop exit
PB: predicated region body
PF: predicated region fallthrough
CT: control target
= control target key end

     0   :  { %s2792_s13 = smov 0   ;;  %s2794_s14 = smov 0   ;;  %s4040_s0 = inlined_call_operand.vmem [shape: f32[2,2,12,18,4], index: 0, kind: input, shape index: {}]   ;;  %s4041_s1 = inlined_call_operand.vmem [shape: f32[2,2,8,16,4], index: 1, kind: input, shape index: {}]   ;;  %s4042_s2 = inlined_call_operand.vmem [shape: f32[36,8], index: 2, kind: input, shape index: {}]   ;;  %s4043_s3 = inlined_call_operand.vmem [shape: f32[1,8], index: 3, kind: input, shape index: {}]   ;;  %s4044_s4 = inlined_call_operand.vmem [shape: f32[72,8], index: 4, kind: input, shape index: {}]   ;;  %s4045_s5 = inlined_call_operand.vmem [shape: f32[1,8], index: 5, kind: input, shape index: {}]   ;;  %s4046_s6 = inlined_call_operand.vmem [shape: f32[8,4], index: 6, kind: input, shape index: {}]   ;;  %s4047_s7 = inlined_call_operand.vmem [shape: f32[1,4], index: 7, kind: input, shape index: {}]   ;;  %s4048_s8 = inlined_call_operand.vmem [shape: f32[2,2,8,16,4], index: 8, kind: output, shape index: {0}]   ;;  %s4049_s9 = inlined_call_operand.vmem [shape: f32[2,2,1,4], index: 9, kind: output, shape index: {1}]   ;;  %s4050_s10 = inlined_call_operand.vmem [shape: f32[2,2,1,4], index: 10, kind: output, shape index: {2}]  }
   0x1   :  { %s2796_s15 = smov 0   ;;  %s2798_s16 = smov 0  }
   0x2   :  { %s2800_s17 = smov 0  }
   0x3 LB: > { %s30_s18 = sadd.s32 1, %s2724_s15  ;;  %s33_s19 = sadd.s32 1, %s2728_s16  ;;  %s2732_s17 = sphi %s2800_s17, %s21_s17   ;;  %s2728_s16 = sphi %s2798_s16, %s4054_s16   ;;  %s2724_s15 = sphi %s2796_s15, %s4053_s15   ;;  %s2720_s14 = sphi %s2794_s14, %s4052_s14   ;;  %s2716_s13 = sphi %s2792_s13, %s4051_s13  }
   0x4   : > { %p31_p0 = scmp.ge.s32.totalorder %s30_s18, 2  ;;  %p2500_p1 = scmp.ge.s32.totalorder %s2732_s17, 1 }
   0x5   : > { %p357_p2 = scmp.lt.s32.totalorder %s2732_s17, 5 }
   0x6   : > { %s4056_s18 = smov (%p31_p0, %s30_s18), 0  ;;  %s4058_s19 = smov (!%p31_p0, %s33_s19), %s2728_s16 }
   0x7   : > { %p358_p3 = pnand %p2500_p1, %p357_p2  ;;  %p35_p4 = scmp.ge.s32.totalorder %s4058_s19, 2 }
   0x8   : > { %p426_p5 = scmp.lt.s32.totalorder (!%p358_p3), %s2720_s14, 1  ;;  %p428_p6 = scmp.lt.s32.totalorder (!%p358_p3), %s2716_s13, 1 }
   0x9   : > { %s4060_s19 = smov (%p35_p4, %s4058_s19), 0  ;;  %361 = sbr.rel (%p358_p3) target bundleno = 1183 (0x49f), region = 52 }
   0xa   : > { %s2734_s28 = smov (!%p358_p3), 4   ;;  %s2735_s29 = smov (!%p358_p3), 8  }
   0xb   : > { %p1279_p7 = scmp.gt.s32.totalorder (!%p358_p3), %s2716_s13, 0  ;;  %s2736_s25 = smov (!%p358_p3), 16  }
   0xe   : > { %s4062_s14 = smov (!%p426_p5, %s2720_s14), 1  ;;  %vm533_vm0 = vcmask 1046528   ;;  %vm644_vm1 = vcmask 1045504   ;;  %vm891_vm2 = vcmask 1043456   ;;  %vm755_vm3 = vcmask 31744  }
   0xf   : > { %s2830_s20 = scalar_select %p428_p6, %s2716_s13, 1  ;;  %vm776_vm4 = vcmask 64512   ;;  %vm830_vm5 = vcmask 97280   ;;  %vm1311_vm8 = vcmask 1040384  }
  0x10   : > { %s2647_s21 = smul.u32 72, %s4062_s14  ;;  %s2503_s26 = sshll.u32 %s4062_s14, 5 }
  0x11   : > { %s2646_s22 = smul.u32 36, %s2830_s20 }
  0x13   : > { %s432_s23 = sadd.s32 %s2647_s21, %s2646_s22 }
  0x14   : > { %s2501_s24 = sshll.u32 %s432_s23, 3 }
  0x15   : > { %s2837_s27 = scalar_lea.vmem %s4040_s0, %s2501_s24 }
  0x16   : > { %v2840_v0 = vld [vmem:[%s2837_s27 + $0xd8] sm:$0xff]  ;;  %v2843_v1 = vld [vmem:[%s2837_s27 + $0xe0] sm:$0xff]  ;;  %v2846_v2 = vld [vmem:[%s2837_s27 + $0xc8] sm:$0xff]  ;;  %s1280_s23 = scalar_select %p1279_p7, 1, 0 }
  0x17   : > { %v579_v3 = vrot.slane %v2840_v0, 1  ;;  %v580_v4 = vrot.slane %v2843_v1, 1  ;;  %v493_v5 = vld [vmem:[%s2837_s27 + $0xd0] sm:$0x3]  ;;  %v575_v6 = vrot.slane %v2846_v2, 1  ;;  %v690_v11 = vrot.slane %v2840_v0, 2 }
  0x18   : > { %v577_v7 = vrot.slane %v493_v5, 1  ;;  %v496_v10 = vld [vmem:[%s2837_s27 + $0xe8] sm:$0x3]  ;;  %v691_v12 = vrot.slane %v2843_v1, 2  ;;  %v686_v13 = vrot.slane %v2846_v2, 2  ;;  %v688_v14 = vrot.slane %v493_v5, 2  ;;  %s1281_s24 = scvt.s32.f32 %s1280_s23 }
  0x19   : > { %v581_v8 = vsel %vm533_vm0, %v579_v3, %v580_v4  ;;  %v582_v15 = vrot.slane %v496_v10, 1  ;;  %v2865_v19 = vld [vmem:[%s2837_s27 + $0xf0] sm:$0xff]  ;;  %v2868_v20 = vld [vmem:[%s2837_s27 + $0xf8] sm:$0xff]  ;;  %v693_v21 = vrot.slane %v496_v10, 2  ;;  %v499_v28 = vld [vmem:[%s2837_s27 + $0x100] sm:$0x3] }
  0x1a   : > { %620 = vrot.lane.b32.xlu1 %v581_v8, %s2734_s28  ;;  %v578_v9 = vsel %vm533_vm0, %v575_v6, %v577_v7  ;;  %v692_v17 = vsel %vm644_vm1, %v690_v11, %v691_v12  ;;  %v689_v18 = vsel %vm644_vm1, %v686_v13, %v688_v14  ;;  %v813_v22 = vrot.slane %v2865_v19, 2  ;;  %v2882_v30 = vld [vmem:[%s2837_s27 + $0xb0] sm:$0xff]  ;;  %v490_v31 = vld [vmem:[%s2837_s27 + $0xb8] sm:$0x3]  ;;  %v2895_v39 = vld [vmem:[%s2837_s27 + $0xc0] sm:$0xff] }
  0x1b   : > { %618 = vrot.lane.b32.xlu0 %v578_v9, %s2734_s28  ;;  %v583_v16 = vsel %vm533_vm0, %v580_v4, %v582_v15  ;;  %v814_v23 = vrot.slane %v2868_v20, 2  ;;  %v802_v24 = vrot.slane %v2865_v19, 1  ;;  %v803_v25 = vrot.slane %v2868_v20, 1  ;;  %v2907_v46 = vld [vmem:[%s2837_s27 + $0x30] sm:$0xff]  ;;  %v2910_v47 = vld [vmem:[%s2837_s27 + $0x38] sm:$0xff]  ;;  %v2915_v49 = vld [vmem:[%s2837_s27] sm:$0xff] }
  0x1c   : > { %622 = vrot.lane.b32.xlu2 %v583_v16, %s2734_s28  ;;  %v694_v26 = vsel %vm644_vm1, %v691_v12, %v693_v21  ;;  %v805_v32 = vrot.slane %v499_v28, 1  ;;  %v570_v33 = vrot.slane %v2882_v30, 1  ;;  %v572_v34 = vrot.slane %v490_v31, 1  ;;  %v2918_v50 = vld [vmem:[%s2837_s27 + $0x8] sm:$0xff]  ;;  %v2931_v59 = vld [vmem:[%s2837_s27 + $0x18] sm:$0xff]  ;;  %v2934_v60 = vld [vmem:[%s2837_s27 + $0x20] sm:$0xff] }
  0x1d   : > { %v815_v27 = vsel %vm644_vm1, %v813_v22, %v814_v23  ;;  %v804_v29 = vsel %vm533_vm0, %v802_v24, %v803_v25  ;;  %v816_v35 = vrot.slane %v499_v28, 2  ;;  %v681_v40 = vrot.slane %v2882_v30, 2  ;;  %v475_v9 = vld [vmem:[%s2837_s27 + $0x40] sm:$0x3]  ;;  %v469_v11 = vld [vmem:[%s2837_s27 + $0x10] sm:$0x3] }
  0x1e   : > { %v806_v36 = vsel %vm533_vm0, %v803_v25, %v805_v32  ;;  %v573_v37 = vsel %vm533_vm0, %v570_v33, %v572_v34  ;;  %v683_v41 = vrot.slane %v490_v31, 2  ;;  %v685_v42 = vrot.slane %v2895_v39, 2  ;;  %v478_v28 = vld [vmem:[%s2837_s27 + $0x58] sm:$0x3]  ;;  %v2971_v31 = vld [vmem:[%s2837_s27 + $0x50] sm:$0xff] }
  0x1f   : > { %v817_v38 = vsel %vm644_vm1, %v814_v23, %v816_v35  ;;  %v574_v43 = vrot.slane %v2895_v39, 1  ;;  %v544_v51 = vrot.slane %v2907_v46, 1  ;;  %v545_v52 = vrot.slane %v2910_v47, 1  ;;  %s1283_s23 = scalar_select %p428_p6, 1, 0 }
  0x20   : > { %v684_v44 = vsel %vm644_vm1, %v681_v40, %v683_v41  ;;  %v687_v45 = vsel %vm644_vm1, %v685_v42, %v686_v13  ;;  %v534_v53 = vrot.slane %v2915_v49, 1  ;;  %v535_v54 = vrot.slane %v2918_v50, 1  ;;  %v2983_v42 = vld [vmem:[%s2837_s27 + $0x60] sm:$0xff] }
  0x21   : > { %v576_v48 = vsel %vm533_vm0, %v574_v43, %v575_v6  ;;  %v655_v55 = vrot.slane %v2907_v46, 2  ;;  %v656_v56 = vrot.slane %v2910_v47, 2  ;;  %v546_v57 = vsel %vm533_vm0, %v544_v51, %v545_v52  ;;  %v2986_v43 = vld [vmem:[%s2837_s27 + $0x68] sm:$0xff] }
  0x22   : > { %731 = vrot.lane.b32.xlu1 %v692_v17, %s2735_s29  ;;  %v536_v58 = vsel %vm533_vm0, %v534_v53, %v535_v54  ;;  %v539_v62 = vrot.slane %v2931_v59, 1  ;;  %v540_v63 = vrot.slane %v2934_v60, 1  ;;  %v650_v3 = vrot.slane %v2931_v59, 2  ;;  %v472_v17 = vld [vmem:[%s2837_s27 + $0x28] sm:$0x3] }
  0x23   : > { %729 = vrot.lane.b32.xlu0 %v689_v18, %s2735_s29  ;;  %v657_v61 = vsel %vm644_vm1, %v655_v55, %v656_v56  ;;  %v651_v4 = vrot.slane %v2934_v60, 2  ;;  %v645_v5 = vrot.slane %v2915_v49, 2  ;;  %v646_v6 = vrot.slane %v2918_v50, 2 }
  0x24   : > { %733 = vrot.lane.b32.xlu2 %v694_v26, %s2735_s29  ;;  %v541_v7 = vsel %vm533_vm0, %v539_v62, %v540_v63  ;;  %v547_v12 = vrot.slane %v475_v9, 1  ;;  %v537_v13 = vrot.slane %v469_v11, 1  ;;  %v658_v14 = vrot.slane %v475_v9, 2  ;;  %v2965_v26 = vld [vmem:[%s2837_s27 + $0x48] sm:$0xff] }
  0x25   : > { %v652_v8 = vsel %vm644_vm1, %v650_v3, %v651_v4  ;;  %v647_v10 = vsel %vm644_vm1, %v645_v5, %v646_v6  ;;  %v542_v21 = vrot.slane %v472_v17, 1  ;;  %v653_v22 = vrot.slane %v472_v17, 2 }
  0x26   : > { %v548_v15 = vsel %vm533_vm0, %v545_v52, %v547_v12  ;;  %v538_v16 = vsel %vm533_vm0, %v535_v54, %v537_v13  ;;  %v659_v18 = vsel %vm644_vm1, %v656_v56, %v658_v14  ;;  %v648_v23 = vrot.slane %v469_v11, 2  ;;  %v481_v54 = vld [vmem:[%s2837_s27 + $0x70] sm:$0x3]  ;;  %v3000_v56 = vld [vmem:[%s2837_s27 + $0x78] sm:$0xff] }
  0x27   : > { %v543_v24 = vsel %vm533_vm0, %v540_v63, %v542_v21  ;;  %v654_v25 = vsel %vm644_vm1, %v651_v4, %v653_v22  ;;  %v550_v32 = vrot.slane %v2971_v31, 1  ;;  %v552_v34 = vrot.slane %v478_v28, 1 }
  0x28   : > { %v660_v35 = vrot.slane %v2965_v26, 2  ;;  %v555_v51 = vrot.slane %v2986_v43, 1  ;;  %v668_v55 = vrot.slane %v481_v54, 2  ;;  %v559_v62 = vrot.slane %v3000_v56, 1 }
  0x29   : > { %v557_v14 = vrot.slane %v481_v54, 1 }
  0x2a   : > { %818 = vrot.lane.b32.xlu1 %v815_v27, %s2735_s29  ;;  %v649_v27 = vsel %vm644_vm1, %v646_v6, %v648_v23  ;;  %v828_v6 = vld [vmem:[%s4042_s2 + $0xc] sm:$0xff] }
  0x2b   : > { %807 = vrot.lane.b32.xlu0 %v804_v29, %s2734_s28  ;;  %v549_v29 = vrot.slane %v2965_v26, 1  ;;  %v558_v22 = vsel %vm533_vm0, %v555_v51, %v557_v14 }
  0x2c   : > { %809 = vrot.lane.b32.xlu2 %v806_v36, %s2734_s28  ;;  %v661_v36 = vrot.slane %v2971_v31, 2 }
  0x2e   : > { %v662_v41 = vsel %vm644_vm1, %v660_v35, %v661_v36 }
  0x32   : > { %614 = vrot.lane.b32.xlu1 %v573_v37, %s2734_s28  ;;  %v551_v37 = vsel %vm533_vm0, %v549_v29, %v550_v32  ;;  %v670_v29 = vrot.slane %v3000_v56, 2 }
  0x33   : > { %820 = vrot.lane.b32.xlu0 %v817_v38, %s2735_s29  ;;  %v553_v38 = vsel %vm533_vm0, %v550_v32, %v552_v34 }
  0x34   : > { %725 = vrot.lane.b32.xlu2 %v684_v44, %s2735_s29  ;;  %v665_v44 = vrot.slane %v2983_v42, 2 }
  0x3a   : > { %727 = vrot.lane.b32.xlu1 %v687_v45, %s2735_s29  ;;  %v666_v45 = vrot.slane %v2986_v43, 2 }
  0x3b   : > { %616 = vrot.lane.b32.xlu0 %v576_v48, %s2734_s28  ;;  %v554_v48 = vrot.slane %v2983_v42, 1 }
  0x3c   : > { %592 = vrot.lane.b32.xlu2 %v546_v57, %s2734_s28  ;;  %v667_v52 = vsel %vm644_vm1, %v665_v44, %v666_v45  ;;  %v3003_v57 = vld [vmem:[%s2837_s27 + $0x80] sm:$0xff]  ;;  %v669_v3 = vsel %vm644_vm1, %v666_v45, %v668_v55 }
  0x3d   : > { %v556_v53 = vsel %vm533_vm0, %v554_v48, %v555_v51  ;;  %v560_v63 = vrot.slane %v3003_v57, 1 }
  0x3f   : > { %v561_v5 = vsel %vm533_vm0, %v559_v62, %v560_v63 }
  0x42   : > { %584 = vrot.lane.b32.xlu1 %v536_v58, %s2734_s28  ;;  %v663_v58 = vrot.slane %v478_v28, 2  ;;  %v797_v28 = vld [vmem:[%s4042_s2] sm:$0xff] }
  0x43   : > { %703 = vrot.lane.b32.xlu0 %v657_v61, %s2735_s29  ;;  %v829_v61 = vld [vmem:[%s4042_s2 + $0x14] sm:$0xf] }
  0x44   : > { %588 = vrot.lane.b32.xlu2 %v541_v7, %s2734_s28  ;;  %2639 = vmatpush.msk.msra.mxu2 %vm891_vm2, %v829_v61  ;;  %v664_v4 = vsel %vm644_vm1, %v661_v36, %v663_v58  ;;  %v484_v7 = vld [vmem:[%s2837_s27 + $0x88] sm:$0x3] }
  0x45   : > { %2510 = vmatpush.msk.msra.mxu0 %vm891_vm2, %v829_v61  ;;  %v562_v9 = vrot.slane %v484_v7, 1  ;;  %v673_v11 = vrot.slane %v484_v7, 2 }
  0x46   : > { %2640 = vmatpush.msra.mxu2 %v828_v6 }
  0x47   : > { %910 = vmatpush.msra.mxu0 %v828_v6  ;;  %v563_v12 = vsel %vm533_vm0, %v560_v63, %v562_v9 }
  0x4a   : > { %699 = vrot.lane.b32.xlu1 %v652_v8, %s2735_s29  ;;  %v798_v8 = vld [vmem:[%s4042_s2 + $0x8] sm:$0xf] }
  0x4b   : > { %695 = vrot.lane.b32.xlu0 %v647_v10, %s2735_s29  ;;  %v671_v10 = vrot.slane %v3003_v57, 2  ;;  %2641 = vmatpush.msk.msrb.mxu2 %vm891_vm2, %v798_v8 }
  0x4c   : > { %594 = vrot.lane.b32.xlu2 %v548_v15, %s2734_s28  ;;  %2531 = vmatpush.msk.msra.mxu1 %vm891_vm2, %v798_v8  ;;  %v3033_v15 = vld [vmem:[%s2837_s27 + $0x90] sm:$0xff] }
  0x4d   : > { %v674_v13 = vsel %vm644_vm1, %v671_v10, %v673_v11  ;;  %v675_v17 = vrot.slane %v3033_v15, 2  ;;  %2642 = vmatpush.msrb.mxu2 %v797_v28  ;;  %v672_v34 = vsel %vm644_vm1, %v670_v29, %v671_v10 }
  0x4e   : > { %996 = vmatpush.msra.mxu1 %v797_v28 }
  0x52   : > { %586 = vrot.lane.b32.xlu1 %v538_v16, %s2734_s28  ;;  %v3036_v16 = vld [vmem:[%s2837_s27 + $0x98] sm:$0xff] }
  0x53   : > { %705 = vrot.lane.b32.xlu0 %v659_v18, %s2735_s29  ;;  %v676_v18 = vrot.slane %v3036_v16, 2 }
  0x54   : > { %590 = vrot.lane.b32.xlu2 %v543_v24, %s2734_s28  ;;  %v487_v24 = vld [vmem:[%s2837_s27 + $0xa0] sm:$0x3] }
  0x55   : > { %v677_v23 = vsel %vm644_vm1, %v675_v17, %v676_v18 }
  0x5a   : > { %701 = vrot.lane.b32.xlu1 %v654_v25, %s2735_s29  ;;  %v565_v25 = vrot.slane %v3036_v16, 1 }
  0x5b   : > { %697 = vrot.lane.b32.xlu0 %v649_v27, %s2735_s29  ;;  %v567_v27 = vrot.slane %v487_v24, 1 }
  0x5c   : > { %596 = vrot.lane.b32.xlu2 %v551_v37, %s2734_s28 }
  0x5d   : > { %v568_v32 = vsel %vm533_vm0, %v565_v25, %v567_v27 }
  0x62   : > { %598 = vrot.lane.b32.xlu1 %v553_v38, %s2734_s28  ;;  %v3055_v38 = vld [vmem:[%s2837_s27 + $0xa8] sm:$0xff] }
  0x63   : > { %707 = vrot.lane.b32.xlu0 %v662_v41, %s2735_s29  ;;  %v569_v41 = vrot.slane %v3055_v38, 1  ;;  %v680_v44 = vrot.slane %v3055_v38, 2 }
  0x64   : > { %709 = vrot.lane.b32.xlu2 %v664_v4, %s2735_s29  ;;  %v678_v4 = vrot.slane %v487_v24, 2 }
  0x65   : > { %v571_v45 = vsel %vm533_vm0, %v569_v41, %v570_v33  ;;  %v682_v48 = vsel %vm644_vm1, %v680_v44, %v681_v40  ;;  %v564_v33 = vrot.slane %v3033_v15, 1 }
  0x67   : > { %v566_v40 = vsel %vm533_vm0, %v564_v33, %v565_v25 }
  0x6a   : > { %711 = vrot.lane.b32.xlu1 %v667_v52, %s2735_s29 }
  0x6b   : > { %600 = vrot.lane.b32.xlu0 %v556_v53, %s2734_s28 }
  0x6c   : > { %602 = vrot.lane.b32.xlu2 %v558_v22, %s2734_s28 }
  0x72   : > { %604 = vrot.lane.b32.xlu1 %v561_v5, %s2734_s28  ;;  %v679_v5 = vsel %vm644_vm1, %v676_v18, %v678_v4 }
  0x73   : > { %713 = vrot.lane.b32.xlu0 %v669_v3, %s2735_s29  ;;  %v1088_v3 = vld [vmem:[%s4042_s2 + $0x20] sm:$0xf] }
  0x74   : > { %715 = vrot.lane.b32.xlu2 %v672_v34, %s2735_s29 }
  0x76   : > { %v623_v21 = vpop.permute.xlu2 %622 }
  0x7a   : > { %717 = vrot.lane.b32.xlu1 %v674_v13, %s2735_s29 }
  0x7b   : > { %606 = vrot.lane.b32.xlu0 %v563_v12, %s2734_s28 }
  0x7c   : > { %608 = vrot.lane.b32.xlu2 %v566_v40, %s2734_s28 }
  0x7e   : > { %v734_v35 = vpop.permute.xlu2 %733 }
  0x82   : > { %610 = vrot.lane.b32.xlu1 %v568_v32, %s2734_s28 }
  0x83   : > { %719 = vrot.lane.b32.xlu0 %v677_v23, %s2735_s29 }
  0x84   : > { %721 = vrot.lane.b32.xlu2 %v679_v5, %s2735_s29 }
  0x86   : > { %v810_v54 = vpop.permute.xlu2 %809 }
  0x87   : > { %v825_v14 = vsel %vm755_vm3, %v2868_v20, %v810_v54 }
  0x8a   : > { %723 = vrot.lane.b32.xlu1 %v682_v48, %s2735_s29 }
  0x8b   : > { %612 = vrot.lane.b32.xlu0 %v571_v45, %s2734_s28 }
  0x8c   : > { %v621_v36 = vpop.permute.xlu1 %620 }
  0x8d   : > { %v619_v37 = vpop.permute.xlu0 %618  ;;  %v774_v58 = vsel %vm755_vm3, %v2840_v0, %v621_v36  ;;  %v775_v0 = vsel %vm755_vm3, %v2843_v1, %v623_v21  ;;  %v1087_v1 = vld [vmem:[%s4042_s2 + $0x18] sm:$0xff] }
  0x8e   : > { %v773_v52 = vsel %vm755_vm3, %v2846_v2, %v619_v37  ;;  %v726_v63 = vpop.permute.xlu2 %725  ;;  %v3093_v8 = vsel %vm776_vm4, %v775_v0, %v734_v35 }
  0x94   : > { %v732_v51 = vpop.permute.xlu1 %731 }
  0x95   : > { %v730_v53 = vpop.permute.xlu0 %729  ;;  %v3080_v2 = vsel %vm776_vm4, %v774_v58, %v732_v51 }
  0x96   : > { %v3070_v55 = vsel %vm776_vm4, %v773_v52, %v730_v53  ;;  %v593_v10 = vpop.permute.xlu2 %592 }
  0x97   : > { %2526 = vmatmul.msk.f32.vlgmr.msra.gmra.mxu2 %vm830_vm5, %v3070_v55  ;;  %v760_v48 = vsel %vm755_vm3, %v2907_v46, %v593_v10 }
  0x98   : > { %2552 = vmatpush.msk.msra.mxu2 %vm891_vm2, %v1088_v3 }
  0x9a   : > { %1113 = vmatpush.msra.mxu2 %v1087_v1 }
  0x9c   : > { %v819_v61 = vpop.permute.xlu1 %818 }
  0x9d   : > { %v808_v62 = vpop.permute.xlu0 %807 }
  0x9e   : > { %v824_v9 = vsel %vm755_vm3, %v2865_v19, %v808_v62  ;;  %v589_v17 = vpop.permute.xlu2 %588 }
  0x9f   : > { %2527 = vmatmul.msk.f32.gmra.mxu2 %vm830_vm5, %v3080_v2  ;;  %v3100_v12 = vsel %vm776_vm4, %v824_v9, %v819_v61  ;;  %v758_v23 = vsel %vm755_vm3, %v2931_v59, %v589_v17 }
  0xa4   : > { %v615_v6 = vpop.permute.xlu1 %614 }
  0xa5   : > { %v821_v7 = vpop.permute.xlu0 %820  ;;  %v771_v22 = vsel %vm755_vm3, %v2882_v30, %v615_v6 }
  0xa6   : > { %v3110_v19 = vsel %vm776_vm4, %v825_v14, %v821_v7  ;;  %v3121_v20 = vsel %vm776_vm4, %v771_v22, %v726_v63  ;;  %v595_v28 = vpop.permute.xlu2 %594 }
  0xa7   : > { %2528 = vmatmul.msk.f32.gmra.mxu2 %vm830_vm5, %v3093_v8 }
  0xac   : > { %v728_v11 = vpop.permute.xlu1 %727 }
  0xad   : > { %v617_v13 = vpop.permute.xlu0 %616 }
  0xae   : > { %v772_v30 = vsel %vm755_vm3, %v2895_v39, %v617_v13  ;;  %v591_v35 = vpop.permute.xlu2 %590 }
  0xaf   : > { %2529 = vmatmul.msk.f32.gmra.mxu2 %vm830_vm5, %v3100_v12  ;;  %v3132_v59 = vsel %vm776_vm4, %v772_v30, %v728_v11  ;;  %v759_v36 = vsel %vm755_vm3, %v2934_v60, %v591_v35 }
  0xb4   : > { %v585_v18 = vpop.permute.xlu1 %584 }
  0xb5   : > { %v704_v21 = vpop.permute.xlu0 %703  ;;  %v756_v24 = vsel %vm755_vm3, %v2915_v49, %v585_v18 }
  0xb6   : > { %v781_v60 = vsel %vm776_vm4, %v760_v48, %v704_v21  ;;  %v597_v52 = vpop.permute.xlu2 %596 }
  0xb7   : > { %2530 = vmatmul.msk.f32.gmra.mxu2 %vm830_vm5, %v3110_v19  ;;  %v762_v46 = vsel %vm755_vm3, %v2965_v26, %v597_v52 }
  0xbc   : > { %v700_v25 = vpop.permute.xlu1 %699 }
  0xbd   : > { %v696_v27 = vpop.permute.xlu0 %695  ;;  %v779_v29 = vsel %vm776_vm4, %v758_v23, %v700_v25 }
  0xbe   : > { %2511 = vmatmul.msk.f32.vlgmr.msra.gmra.mxu0 %vm830_vm5, %v779_v29  ;;  %v777_v32 = vsel %vm776_vm4, %v756_v24, %v696_v27  ;;  %v710_v40 = vpop.permute.xlu2 %709 }
  0xbf   : > { %2547 = vmatmul.msk.f32.vlgmr.msrb.gmra.mxu2 %vm830_vm5, %v3121_v20  ;;  %2532 = vmatmul.msk.f32.vlgmr.msra.gmra.mxu1 %vm830_vm5, %v777_v32 }
  0xc4   : > { %v587_v49 = vpop.permute.xlu1 %586 }
  0xc5   : > { %v706_v34 = vpop.permute.xlu0 %705  ;;  %v757_v37 = vsel %vm755_vm3, %v2918_v50, %v587_v49  ;;  %v761_v50 = vsel %vm755_vm3, %v2910_v47, %v595_v28 }
  0xc6   : > { %v782_v51 = vsel %vm776_vm4, %v761_v50, %v706_v34  ;;  %v603_v3 = vpop.permute.xlu2 %602 }
  0xc7   : > { %2548 = vmatmul.msk.f32.gmra.mxu2 %vm830_vm5, %v3132_v59 }
  0xcc   : > { %v702_v41 = vpop.permute.xlu1 %701 }
  0xcd   : > { %v698_v44 = vpop.permute.xlu0 %697  ;;  %v780_v45 = vsel %vm776_vm4, %v759_v36, %v702_v41 }
  0xce   : > { %2512 = vmatmul.msk.f32.gmra.mxu0 %vm830_vm5, %v780_v45  ;;  %v778_v39 = vsel %vm776_vm4, %v757_v37, %v698_v44  ;;  %v716_v6 = vpop.permute.xlu2 %715 }
  0xcf   : > { %2533 = vmatmul.msk.f32.gmra.mxu1 %vm830_vm5, %v778_v39  ;;  %2549 = vmatmul.msk.f32.gmra.mxu2 %vm830_vm5, %v3070_v55 }
  0xd4   : > { %v599_v33 = vpop.permute.xlu1 %598 }
  0xd5   : > { %v708_v53 = vpop.permute.xlu0 %707  ;;  %v763_v47 = vsel %vm755_vm3, %v2971_v31, %v599_v33  ;;  %v765_v31 = vsel %vm755_vm3, %v2986_v43, %v603_v3 }
  0xd6   : > { %2513 = vmatmul.msk.f32.gmra.mxu0 %vm830_vm5, %v781_v60  ;;  %v783_v54 = vsel %vm776_vm4, %v762_v46, %v708_v53  ;;  %v784_v58 = vsel %vm776_vm4, %v763_v47, %v710_v40  ;;  %v609_v13 = vpop.permute.xlu2 %608  ;;  %v1285_v47 = vstv %s1281_s24  ;;  %s1284_s24 = scvt.s32.f32 %s1283_s23 }
  0xd7   : > { %2534 = vmatmul.msk.f32.gmra.mxu1 %vm830_vm5, %v779_v29  ;;  %2550 = vmatmul.msk.f32.gmra.mxu2 %vm830_vm5, %v3080_v2 }
  0xdc   : > { %v712_v62 = vpop.permute.xlu1 %711 }
  0xdd   : > { %v601_v61 = vpop.permute.xlu0 %600 }
  0xde   : > { %2514 = vmatmul.msk.f32.gmra.mxu0 %vm830_vm5, %v782_v51  ;;  %v764_v26 = vsel %vm755_vm3, %v2983_v42, %v601_v61  ;;  %v722_v18 = vpop.permute.xlu2 %721 }
  0xdf   : > { %2535 = vmatmul.msk.f32.gmra.mxu1 %vm830_vm5, %v780_v45  ;;  %2551 = vmatmul.msk.f32.gmra.mxu2 %vm830_vm5, %v3093_v8  ;;  %v785_v63 = vsel %vm776_vm4, %v764_v26, %v712_v62 }
  0xe4   : > { %v605_v0 = vpop.permute.xlu1 %604 }
  0xe5   : > { %v714_v4 = vpop.permute.xlu0 %713  ;;  %v766_v42 = vsel %vm755_vm3, %v3000_v56, %v605_v0  ;;  %v768_v56 = vsel %vm755_vm3, %v3033_v15, %v609_v13 }
  0xe6   : > { %2515 = vmatmul.msk.f32.gmra.mxu0 %vm830_vm5, %v783_v54  ;;  %v786_v5 = vsel %vm776_vm4, %v765_v31, %v714_v4  ;;  %v787_v7 = vsel %vm776_vm4, %v766_v42, %v716_v6 }
  0xe7   : > { %2536 = vmatmul.msk.f32.gmra.mxu1 %vm830_vm5, %v781_v60  ;;  %2553 = vmatmul.msk.f32.vlgmr.msra.gmra.mxu2 %vm830_vm5, %v781_v60 }
  0xec   : > { %v718_v10 = vpop.permute.xlu1 %717 }
  0xed   : > { %v607_v9 = vpop.permute.xlu0 %606 }
  0xee   : > { %2516 = vmatmul.msk.f32.gmra.mxu0 %vm830_vm5, %v784_v58  ;;  %v767_v43 = vsel %vm755_vm3, %v3003_v57, %v607_v9 }
  0xef   : > { %2537 = vmatmul.msk.f32.gmra.mxu1 %vm830_vm5, %v782_v51  ;;  %2554 = vmatmul.msk.f32.gmra.mxu2 %vm830_vm5, %v782_v51  ;;  %v788_v11 = vsel %vm776_vm4, %v767_v43, %v718_v10 }
  0xf4   : > { %v611_v17 = vpop.permute.xlu1 %610 }
  0xf5   : > { %v720_v1 = vpop.permute.xlu0 %719  ;;  %v769_v57 = vsel %vm755_vm3, %v3036_v16, %v611_v17 }
  0xf6   : > { %2517 = vmatmul.msk.f32.gmra.mxu0 %vm830_vm5, %v785_v63  ;;  %v789_v14 = vsel %vm776_vm4, %v768_v56, %v720_v1  ;;  %v790_v22 = vsel %vm776_vm4, %v769_v57, %v722_v18 }
  0xf7   : > { %2538 = vmatmul.msk.f32.gmra.mxu1 %vm830_vm5, %v783_v54  ;;  %2555 = vmatmul.msk.f32.gmra.mxu2 %vm830_vm5, %v783_v54 }
  0xfc   : > { %v724_v24 = vpop.permute.xlu1 %723 }
  0xfd   : > { %v613_v23 = vpop.permute.xlu0 %612 }
  0xfe   : > { %2518 = vmatmul.msk.f32.gmra.mxu0 %vm830_vm5, %v786_v5  ;;  %v770_v15 = vsel %vm755_vm3, %v3055_v38, %v613_v23 }
  0xff   : > { %2539 = vmatmul.msk.f32.gmra.mxu1 %vm830_vm5, %v784_v58  ;;  %2556 = vmatmul.msk.f32.gmra.mxu2 %vm830_vm5, %v784_v58  ;;  %v791_v16 = vsel %vm776_vm4, %v770_v15, %v724_v24 }
 0x106   : > { %2519 = vmatmul.msk.f32.gmra.mxu0 %vm830_vm5, %v787_v7 }
 0x107   : > { %2540 = vmatmul.msk.f32.gmra.mxu1 %vm830_vm5, %v785_v63  ;;  %2557 = vmatmul.msk.f32.gmra.mxu2 %vm830_vm5, %v785_v63 }
 0x10e   : > { %2520 = vmatmul.msk.f32.gmra.mxu0 %vm830_vm5, %v788_v11 }
 0x10f   : > { %2541 = vmatmul.msk.f32.gmra.mxu1 %vm830_vm5, %v786_v5  ;;  %2558 = vmatmul.msk.f32.gmra.mxu2 %vm830_vm5, %v786_v5 }
 0x116   : > { %2521 = vmatmul.msk.f32.gmra.mxu0 %vm830_vm5, %v789_v14 }
 0x117   : > { %2542 = vmatmul.msk.f32.gmra.mxu1 %vm830_vm5, %v787_v7  ;;  %2559 = vmatmul.msk.f32.gmra.mxu2 %vm830_vm5, %v787_v7 }
 0x11a   : > { %v3204_v21 = vpop.f32.mrf.mxu2 }
 0x11e   : > { %2522 = vmatmul.msk.f32.gmra.mxu0 %vm830_vm5, %v790_v22 }
 0x11f   : > { %2543 = vmatmul.msk.f32.gmra.mxu1 %vm830_vm5, %v788_v11  ;;  %2560 = vmatmul.msk.f32.gmra.mxu2 %vm830_vm5, %v788_v11 }
 0x122   : > { %v3212_v25 = vpop.f32.mrf.mxu2 }
 0x126   : > { %2523 = vmatmul.msk.f32.gmra.mxu0 %vm830_vm5, %v791_v16 }
 0x127   : > { %2544 = vmatmul.msk.f32.gmra.mxu1 %vm830_vm5, %v789_v14  ;;  %2561 = vmatmul.msk.f32.gmra.mxu2 %vm830_vm5, %v789_v14 }
 0x12a   : > { %v963_v27 = vpop.f32.mrf.mxu2 }
 0x12e   : > { %2524 = vmatmul.msk.f32.gmra.mxu0 %vm830_vm5, %v3121_v20 }
 0x12f   : > { %2545 = vmatmul.msk.f32.gmra.mxu1 %vm830_vm5, %v790_v22  ;;  %2562 = vmatmul.msk.f32.gmra.mxu2 %vm830_vm5, %v790_v22 }
 0x132   : > { %v966_v38 = vpop.f32.mrf.mxu2 }
 0x136   : > { %2525 = vmatmul.msk.f32.gmra.mxu0 %vm830_vm5, %v3132_v59 }
 0x137   : > { %2546 = vmatmul.msk.f32.gmra.mxu1 %vm830_vm5, %v791_v16  ;;  %2563 = vmatmul.msk.f32.gmra.mxu2 %vm830_vm5, %v791_v16 }
 0x13a   : > { %v3226_v28 = vpop.f32.mrf.mxu2 }
 0x13b   : > { %v912_v32 = vpop.f32.mrf.mxu0 }
 0x13c   : > { %v998_v30 = vpop.f32.mrf.mxu1 }
 0x13d   : > { %v999_v48 = vadd.f32 %v998_v30, %v912_v32 }
 0x13f   : > { %2564 = vmatmul.msk.f32.gmra.mxu2 %vm830_vm5, %v3121_v20 }
 0x142   : > { %v3230_v29 = vpop.f32.mrf.mxu2 }
 0x147   : > { %2565 = vmatmul.msk.f32.gmra.mxu2 %vm830_vm5, %v3132_v59 }
 0x14a   : > { %v3234_v49 = vpop.f32.mrf.mxu2 }
 0x14b   : > { %v915_v35 = vpop.f32.mrf.mxu0 }
 0x14c   : > { %v1001_v37 = vpop.f32.mrf.mxu1 }
 0x14f   : > { %2566 = vmatmul.msk.f32.gmra.mxu2 %vm830_vm5, %v3070_v55 }
 0x152   : > { %v1049_v34 = vpop.f32.mrf.mxu2 }
 0x153   : > { %v3238_v36 = vadd.f32 %v1049_v34, %v963_v27  ;;  %v918_v59 = vpop.f32.mrf.mxu0 }
 0x154   : > { %v1004_v44 = vpop.f32.mrf.mxu1 }
 0x155   : > { %v1005_v26 = vadd.f32 %v1004_v44, %v918_v59 }
 0x157   : > { %2567 = vmatmul.msk.f32.gmra.mxu2 %vm830_vm5, %v3080_v2  ;;  %v3253_v2 = vld [vmem:[%s4043_s3] ss:$0 sm:$0xff] }
 0x15a   : > { %v1052_v20 = vpop.f32.mrf.mxu2 }
 0x15b   : > { %v3242_v41 = vadd.f32 %v1052_v20, %v966_v38  ;;  %v921_v55 = vpop.f32.mrf.mxu0 }
 0x15c   : > { %v1007_v39 = vpop.f32.mrf.mxu1 }
 0x15d   : > { %v1008_v7 = vadd.f32 %v1007_v39, %v921_v55 }
 0x15f   : > { %2568 = vmatmul.msk.f32.gmra.mxu2 %vm830_vm5, %v3093_v8  ;;  %v1002_v8 = vadd.f32 %v1001_v37, %v915_v35 }
 0x162   : > { %v3246_v45 = vpop.f32.mrf.mxu2 }
 0x163   : > { %v924_v52 = vpop.f32.mrf.mxu0 }
 0x167   : > { %2569 = vmatmul.msk.f32.gmra.mxu2 %vm830_vm5, %v3100_v12  ;;  %v1010_v12 = vpop.f32.mrf.mxu1 }
 0x168   : > { %v1011_v17 = vadd.f32 %v1010_v12, %v924_v52 }
 0x16a   : > { %v1115_v60 = vpop.f32.mrf.mxu2 }
 0x16b   : > { %v1175_v50 = vadd.f32 %v1115_v60, %v999_v48  ;;  %v927_v3 = vpop.f32.mrf.mxu0 }
 0x16d   : > { %v1199_v51 = vadd.f32 %v3253_v2, %v1175_v50 }
 0x16f   : > { %2570 = vmatmul.msk.f32.gmra.mxu2 %vm830_vm5, %v3110_v19  ;;  %v1239_v46 = vmul.f32 0.01, %v1199_v51  ;;  %vm1219_vm6 = vcmp.gt.f32.partialorder %v1199_v51, 0.0  ;;  %v1013_v5 = vpop.f32.mrf.mxu1 }
 0x170   : > { %v1014_v55 = vadd.f32 %v1013_v5, %v927_v3 }
 0x171   : > { %v1259_v33 = vsel %vm1219_vm6, %v1199_v51, %v1239_v46 }
 0x172   : > { %v1118_v53 = vpop.f32.mrf.mxu2  ;;  %v3260_v61 = vmul.f32 %v1285_v47, %v1259_v33 }
 0x173   : > { %v1176_v54 = vadd.f32 %v1118_v53, %v1002_v8  ;;  %v930_v11 = vpop.f32.mrf.mxu0 }
 0x174   : > { %v1312_v4 = vrot.slane %v3260_v61, 7 }
 0x175   : > { %v1200_v40 = vadd.f32 %v3253_v2, %v1176_v54 }
 0x177   : > { %vm1220_vm7 = vcmp.gt.f32.partialorder %v1200_v40, 0.0  ;;  %v1240_v58 = vmul.f32 0.01, %v1200_v40  ;;  %v1016_v56 = vpop.f32.mrf.mxu1 }
 0x178   : > { %v1017_v52 = vadd.f32 %v1016_v56, %v930_v11 }
 0x179   : > { %v1260_v62 = vsel %vm1220_vm7, %v1200_v40, %v1240_v58 }
 0x17a   : > { %v3262_v63 = vmul.f32 %v1285_v47, %v1260_v62  ;;  %v1121_v19 = vpop.f32.mrf.mxu2 }
 0x17b   : > { %v1177_v31 = vadd.f32 %v1121_v19, %v1005_v26  ;;  %v933_v35 = vpop.f32.mrf.mxu0 }
 0x17c   : > { %v1313_v0 = vrot.slane %v3262_v63, 7 }
 0x17d   : > { %v1201_v6 = vadd.f32 %v3253_v2, %v1177_v31 }
 0x17e   : > { %v3271_v42 = vsel %vm1311_vm8, %v1312_v4, %v1313_v0 }
 0x17f   : > { %v1241_v43 = vmul.f32 0.01, %v1201_v6  ;;  %vm1221_vm9 = vcmp.gt.f32.partialorder %v1201_v6, 0.0  ;;  %v1019_v59 = vpop.f32.mrf.mxu1 }
 0x180   : > { %v1020_v11 = vadd.f32 %v1019_v59, %v933_v35 }
 0x181   : > { %v3275_v1 = vsel %vm1221_vm9, %v1201_v6, %v1241_v43 }
 0x182   : > { %v1124_v9 = vpop.f32.mrf.mxu2  ;;  %v1315_v18 = vrot.slane %v3275_v1, 7 }
 0x183   : > { %v1178_v10 = vadd.f32 %v1124_v9, %v1008_v7  ;;  %v936_v46 = vpop.f32.mrf.mxu0 }
 0x185   : > { %v1202_v13 = vadd.f32 %v3253_v2, %v1178_v10 }
 0x187   : > { %vm1222_vm10 = vcmp.gt.f32.partialorder %v1202_v13, 0.0  ;;  %v1242_v14 = vmul.f32 0.01, %v1202_v13  ;;  %v1022_v54 = vpop.f32.mrf.mxu1 }
 0x189   : > { %v1262_v57 = vsel %vm1222_vm10, %v1202_v13, %v1242_v14 }
 0x18a   : > { %v1316_v22 = vrot.slane %v1262_v57, 7  ;;  %v1127_v23 = vpop.f32.mrf.mxu2 }
 0x18b   : > { %v1179_v15 = vadd.f32 %v1127_v23, %v1011_v17  ;;  %v939_v14 = vpop.f32.mrf.mxu0 }
 0x18c   : > { %v3281_v24 = vsel %vm1311_vm8, %v1315_v18, %v1316_v22  ;;  %v1383_v16 = vsel %vm1311_vm8, %v1316_v22, 0.0 }
 0x18d   : > { %v1203_v27 = vadd.f32 %v3253_v2, %v1179_v15  ;;  %v1502_v38 = vrot.slane %v3281_v24, 2  ;;  %v1504_v32 = vrot.slane %v1383_v16, 2  ;;  %v1414_v30 = vrot.slane %v3281_v24, 1 }
 0x18e   : > { %v1416_v34 = vrot.slane %v1383_v16, 1 }
 0x18f   : > { %vm1223_vm11 = vcmp.gt.f32.partialorder %v1203_v27, 0.0  ;;  %v1243_v37 = vmul.f32 0.01, %v1203_v27  ;;  %v1505_v20 = vsel %vm644_vm1, %v1502_v38, %v1504_v32  ;;  %v1025_v22 = vpop.f32.mrf.mxu1  ;;  %v1023_v32 = vadd.f32 %v1022_v54, %v936_v46 }
 0x190   : > { %1542 = vrot.lane.b32.xlu0 %v1505_v20, %s2736_s25  ;;  %v1417_v44 = vsel %vm533_vm0, %v1414_v30, %v1416_v34 }
 0x191   : > { %1454 = vrot.lane.b32.xlu2 %v1417_v44, %s2735_s29  ;;  %v1263_v39 = vsel %vm1223_vm11, %v1203_v27, %v1243_v37 }
 0x192   : > { %v1130_v48 = vpop.f32.mrf.mxu2  ;;  %v1318_v50 = vrot.slane %v1263_v39, 7 }
 0x193   : > { %v1180_v60 = vadd.f32 %v1130_v48, %v1014_v55  ;;  %v942_v48 = vpop.f32.mrf.mxu0 }
 0x194   : > { %v3297_v53 = vsel %vm1311_vm8, 0.0, %v1318_v50 }
 0x195   : > { %v1204_v51 = vadd.f32 %v3253_v2, %v1180_v60  ;;  %v1506_v26 = vrot.slane %v3297_v53, 2  ;;  %v1418_v5 = vrot.slane %v3297_v53, 1 }
 0x197   : > { %vm1224_vm12 = vcmp.gt.f32.partialorder %v1204_v51, 0.0  ;;  %v1244_v8 = vmul.f32 0.01, %v1204_v51 }
 0x199   : > { %v1264_v12 = vsel %vm1224_vm12, %v1204_v51, %v1244_v8 }
 0x19a   : > { %v1319_v33 = vrot.slane %v1264_v12, 7  ;;  %v1133_v47 = vpop.f32.mrf.mxu2 }
 0x19b   : > { %v1181_v40 = vadd.f32 %v1133_v47, %v1017_v52  ;;  %v1028_v52 = vpop.f32.mrf.mxu1 }
 0x19c   : > { %v3300_v58 = vsel %vm1311_vm8, %v1318_v50, %v1319_v33  ;;  %v1384_v62 = vsel %vm1311_vm8, %v1319_v33, 0.0 }
 0x19d   : > { %v1205_v19 = vadd.f32 %v3253_v2, %v1181_v40  ;;  %v1507_v3 = vrot.slane %v3300_v58, 2  ;;  %v1419_v31 = vrot.slane %v3300_v58, 1  ;;  %v1421_v6 = vrot.slane %v1384_v62, 1 }
 0x19e   : > { %v1509_v57 = vrot.slane %v1384_v62, 2  ;;  %v1026_v40 = vadd.f32 %v1025_v22, %v939_v14  ;;  %v1029_v14 = vadd.f32 %v1028_v52, %v942_v48 }
 0x19f   : > { %vm1225_vm13 = vcmp.gt.f32.partialorder %v1205_v19, 0.0  ;;  %v1245_v7 = vmul.f32 0.01, %v1205_v19  ;;  %v1508_v9 = vsel %vm644_vm1, %v1506_v26, %v1507_v3  ;;  %v1420_v43 = vsel %vm533_vm0, %v1418_v5, %v1419_v31 }
 0x1a0   : > { %1544 = vrot.lane.b32.xlu2 %v1508_v9, %s2736_s25  ;;  %v1422_v10 = vsel %vm533_vm0, %v1419_v31, %v1421_v6  ;;  %1456 = vrot.lane.b32.xlu1 %v1420_v43, %s2735_s29  ;;  %v1510_v27 = vsel %vm644_vm1, %v1507_v3, %v1509_v57  ;;  %v3337_v6 = vld [vmem:[%s2837_s27 + $0x108] sm:$0xff]  ;;  %v945_v9 = vpop.f32.mrf.mxu0 }
 0x1a1   : > { %1458 = vrot.lane.b32.xlu0 %v1422_v10, %s2735_s29  ;;  %v1265_v13 = vsel %vm1225_vm13, %v1205_v19, %v1245_v7  ;;  %v3340_v7 = vld [vmem:[%s2837_s27 + $0x110] sm:$0xff] }
 0x1a2   : > { %v1136_v56 = vpop.f32.mrf.mxu2  ;;  %v1321_v23 = vrot.slane %v1265_v13, 7  ;;  %v1061_v13 = vrot.slane %v3337_v6, 1 }
 0x1a3   : > { %v1182_v17 = vadd.f32 %v1136_v56, %v1020_v11  ;;  %v1031_v11 = vpop.f32.mrf.mxu1  ;;  %v1062_v56 = vrot.slane %v3340_v7, 1 }
 0x1a4   : > { %v3318_v35 = vsel %vm1311_vm8, 0.0, %v1321_v23 }
 0x1a5   : > { %v1206_v15 = vadd.f32 %v3253_v2, %v1182_v17  ;;  %v1511_v55 = vrot.slane %v3318_v35, 2  ;;  %v1423_v8 = vrot.slane %v3318_v35, 1 }
 0x1a7   : > { %vm1226_vm14 = vcmp.gt.f32.partialorder %v1206_v15, 0.0  ;;  %v1246_v16 = vmul.f32 0.01, %v1206_v15 }
 0x1a8   : > { %1546 = vrot.lane.b32.xlu1 %v1510_v27, %s2736_s25 }
 0x1a9   : > { %v1266_v34 = vsel %vm1226_vm14, %v1206_v15, %v1246_v16  ;;  %v1063_v16 = vsel %vm533_vm0, %v1061_v13, %v1062_v56 }
 0x1aa   : > { %v1322_v37 = vrot.slane %v1266_v34, 7  ;;  %v1139_v20 = vpop.f32.mrf.mxu2 }
 0x1ab   : > { %v1183_v59 = vadd.f32 %v1139_v20, %v1023_v32 }
 0x1ac   : > { %v3321_v44 = vsel %vm1311_vm8, %v1321_v23, %v1322_v37  ;;  %v1385_v39 = vsel %vm1311_vm8, %v1322_v37, 0.0 }
 0x1ad   : > { %v1207_v60 = vadd.f32 %v3253_v2, %v1183_v59  ;;  %v1512_v50 = vrot.slane %v3321_v44, 2  ;;  %v1424_v51 = vrot.slane %v3321_v44, 1  ;;  %v1426_v46 = vrot.slane %v1385_v39, 1 }
 0x1ae   : > { %v1514_v3 = vrot.slane %v1385_v39, 2 }
 0x1af   : > { %vm1227_vm15 = vcmp.gt.f32.partialorder %v1207_v60, 0.0  ;;  %v1247_v12 = vmul.f32 0.01, %v1207_v60  ;;  %v1513_v54 = vsel %vm644_vm1, %v1511_v55, %v1512_v50  ;;  %v1425_v33 = vsel %vm533_vm0, %v1423_v8, %v1424_v51  ;;  %v1034_v8 = vpop.f32.mrf.mxu1 }
 0x1b0   : > { %1548 = vrot.lane.b32.xlu0 %v1513_v54, %s2736_s25  ;;  %v1427_v47 = vsel %vm533_vm0, %v1424_v51, %v1426_v46  ;;  %1460 = vrot.lane.b32.xlu2 %v1425_v33, %s2735_s29  ;;  %v1515_v10 = vsel %vm644_vm1, %v1512_v50, %v1514_v3  ;;  %v1032_v50 = vadd.f32 %v1031_v11, %v945_v9  ;;  %v948_v51 = vpop.f32.mrf.mxu0  ;;  %v1072_v46 = vrot.slane %v3337_v6, 2  ;;  %v502_v3 = vld [vmem:[%s2837_s27 + $0x118] sm:$0x3] }
 0x1b1   : > { %1462 = vrot.lane.b32.xlu1 %v1427_v47, %s2735_s29  ;;  %v1267_v26 = vsel %vm1227_vm15, %v1207_v60, %v1247_v12  ;;  %v1073_v12 = vrot.slane %v3340_v7, 2  ;;  %v1075_v11 = vrot.slane %v502_v3, 2  ;;  %vm1600_vm15 = vcmask 130048  }
 0x1b2   : > { %v1142_v62 = vpop.f32.mrf.mxu2  ;;  %v1324_v31 = vrot.slane %v1267_v26, 7 }
 0x1b3   : > { %v1184_v19 = vadd.f32 %v1142_v62, %v1026_v40 }
 0x1b4   : > { %v3347_v57 = vsel %vm1311_vm8, 0.0, %v1324_v31 }
 0x1b5   : > { %v1208_v5 = vadd.f32 %v3253_v2, %v1184_v19  ;;  %v1516_v32 = vrot.slane %v3347_v57, 2  ;;  %v1428_v20 = vrot.slane %v3347_v57, 1  ;;  %v1074_v19 = vsel %vm644_vm1, %v1072_v46, %v1073_v12 }
 0x1b7   : > { %vm1228_vm2 = vcmp.gt.f32.partialorder %v1208_v5, 0.0  ;;  %v1248_v43 = vmul.f32 0.01, %v1208_v5 }
 0x1b8   : > { %1550 = vrot.lane.b32.xlu2 %v1515_v10, %s2736_s25 }
 0x1b9   : > { %v1268_v17 = vsel %vm1228_vm2, %v1208_v5, %v1248_v43  ;;  %v1035_v43 = vadd.f32 %v1034_v8, %v948_v51  ;;  %vm1651_vm2 = vcmask 195584  }
 0x1ba   : > { %v1325_v22 = vrot.slane %v1268_v17, 7  ;;  %v1145_v23 = vpop.f32.mrf.mxu2  ;;  %v1064_v17 = vrot.slane %v502_v3, 1 }
 0x1bb   : > { %v1185_v15 = vadd.f32 %v1145_v23, %v1029_v14 }
 0x1bc   : > { %v3351_v27 = vsel %vm1311_vm8, %v1324_v31, %v1325_v22  ;;  %v1386_v60 = vsel %vm1311_vm8, %v1325_v22, 0.0 }
 0x1bd   : > { %v1209_v34 = vadd.f32 %v3253_v2, %v1185_v15  ;;  %v1517_v37 = vrot.slane %v3351_v27, 2  ;;  %v1429_v59 = vrot.slane %v3351_v27, 1  ;;  %v1519_v47 = vrot.slane %v1386_v60, 2  ;;  %v951_v15 = vpop.f32.mrf.mxu0 }
 0x1be   : > { %v1431_v40 = vrot.slane %v1386_v60, 1 }
 0x1bf   : > { %v1249_v55 = vmul.f32 0.01, %v1209_v34  ;;  %v1518_v39 = vsel %vm644_vm1, %v1516_v32, %v1517_v37  ;;  %v1430_v48 = vsel %vm533_vm0, %v1428_v20, %v1429_v59  ;;  %vm1229_vm6 = vcmp.gt.f32.partialorder %v1209_v34, 0.0 }
 0x1c0   : > { %1066 = vrot.lane.b32.xlu2 %v1063_v16, %s2734_s28  ;;  %1552 = vrot.lane.b32.xlu1 %v1518_v39, %s2736_s25  ;;  %v1520_v5 = vsel %vm644_vm1, %v1517_v37, %v1519_v47  ;;  %v1432_v9 = vsel %vm533_vm0, %v1429_v59, %v1431_v40  ;;  %v1037_v16 = vpop.f32.mrf.mxu1  ;;  %v1076_v37 = vsel %vm644_vm1, %v1073_v12, %v1075_v11 }
 0x1c1   : > { %1464 = vrot.lane.b32.xlu0 %v1430_v48, %s2735_s29  ;;  %v1269_v54 = vsel %vm1229_vm6, %v1209_v34, %v1249_v55  ;;  %v1065_v55 = vsel %vm533_vm0, %v1062_v56, %v1064_v17 }
 0x1c2   : > { %v1148_v52 = vpop.f32.mrf.mxu2  ;;  %v1327_v62 = vrot.slane %v1269_v54, 7 }
 0x1c3   : > { %v1186_v33 = vadd.f32 %v1148_v52, %v1032_v50  ;;  %v1038_v50 = vadd.f32 %v1037_v16, %v951_v15 }
 0x1c4   : > { %v3375_v22 = vsel %vm1311_vm8, 0.0, %v1327_v62 }
 0x1c5   : > { %v1210_v26 = vadd.f32 %v3253_v2, %v1186_v33  ;;  %v1433_v20 = vrot.slane %v3375_v22, 1  ;;  %v954_v47 = vpop.f32.mrf.mxu0 }
 0x1c7   : > { %vm1230_vm7 = vcmp.gt.f32.partialorder %v1210_v26, 0.0  ;;  %v1250_v31 = vmul.f32 0.01, %v1210_v26 }
 0x1c8   : > { %1554 = vrot.lane.b32.xlu2 %v1520_v5, %s2736_s25  ;;  %1466 = vrot.lane.b32.xlu1 %v1432_v9, %s2735_s29  ;;  %v1040_v40 = vpop.f32.mrf.mxu1 }
 0x1c9   : > { %v1270_v10 = vsel %vm1230_vm7, %v1210_v26, %v1250_v31  ;;  %1077 = vrot.lane.b32.xlu0 %v1074_v19, %s2735_s29  ;;  %v1521_v26 = vrot.slane %v3375_v22, 2  ;;  %v1041_v5 = vadd.f32 %v1040_v40, %v954_v47  ;;  %v1047_v47 = vadd.f32 %v3234_v49, %v3212_v25 }
 0x1ca   : > { %v1328_v13 = vrot.slane %v1270_v10, 7  ;;  %v1151_v14 = vpop.f32.mrf.mxu2 }
 0x1cb   : > { %v1187_v23 = vadd.f32 %v1151_v14, %v1035_v43 }
 0x1cc   : > { %v3378_v32 = vsel %vm1311_vm8, %v1327_v62, %v1328_v13  ;;  %v1387_v60 = vsel %vm1311_vm8, %v1328_v13, 0.0  ;;  %v1650_v13 = vld [vmem:[%s4044_s4 + $0x28] sm:$0xff] }
 0x1cd   : > { %v1211_v34 = vadd.f32 %v3253_v2, %v1187_v23  ;;  %v1434_v59 = vrot.slane %v3378_v32, 1  ;;  %v1522_v46 = vrot.slane %v3378_v32, 2  ;;  %v1436_v12 = vrot.slane %v1387_v60, 1  ;;  %2643 = vmatpush.msra.mxu3 %v1650_v13  ;;  %1713 = vmatpush.msrb.mxu2 %v1650_v13 }
 0x1ce   : > { %v1524_v56 = vrot.slane %v1387_v60, 2 }
 0x1cf   : > { %vm1231_vm9 = vcmp.gt.f32.partialorder %v1211_v34, 0.0  ;;  %v1251_v39 = vmul.f32 0.01, %v1211_v34  ;;  %v1435_v48 = vsel %vm533_vm0, %v1433_v20, %v1434_v59  ;;  %v1437_v19 = vsel %vm533_vm0, %v1434_v59, %v1436_v12 }
 0x1d0   : > { %1079 = vrot.lane.b32.xlu1 %v1076_v37, %s2735_s29  ;;  %1468 = vrot.lane.b32.xlu2 %v1435_v48, %s2735_s29  ;;  %v1525_v3 = vsel %vm644_vm1, %v1522_v46, %v1524_v56  ;;  %v1523_v31 = vsel %vm644_vm1, %v1521_v26, %v1522_v46  ;;  %v1648_v46 = vld [vmem:[%s4044_s4 + $0x18] sm:$0xff] }
 0x1d1   : > { %1068 = vrot.lane.b32.xlu0 %v1065_v55, %s2734_s28  ;;  %v1271_v51 = vsel %vm1231_vm9, %v1211_v34, %v1251_v39  ;;  %s2502_s28 = sshll.u32 %s2830_s20, 4 }
 0x1d2   : > { %v1154_v8 = vpop.f32.mrf.mxu2  ;;  %v1330_v54 = vrot.slane %v1271_v51, 7  ;;  %v1649_v51 = vld [vmem:[%s4044_s4 + $0x20] sm:$0xff]  ;;  %s441_s30 = sadd.s32 %s2503_s26, %s2502_s28 }
 0x1d3   : > { %v1188_v52 = vadd.f32 %v1154_v8, %v1038_v50  ;;  %v1044_v50 = vadd.f32 %v3230_v29, %v3204_v21  ;;  %2644 = vmatpush.msra.mxu3 %v1649_v51  ;;  %1714 = vmatpush.msrb.mxu2 %v1649_v51  ;;  %s2504_s11 = sshll.u32 %s441_s30, 3 }
 0x1d4   : > { %v3400_v43 = vsel %vm1311_vm8, 0.0, %v1330_v54  ;;  %s3817_s22 = scalar_lea.vmem %s4041_s1, %s2504_s11 }
 0x1d5   : > { %v1212_v33 = vadd.f32 %v3253_v2, %v1188_v52  ;;  %v1526_v23 = vrot.slane %v3400_v43, 2  ;;  %v1438_v59 = vrot.slane %v3400_v43, 1  ;;  %2645 = vmatpush.msra.mxu3 %v1648_v46  ;;  %1715 = vmatpush.msrb.mxu2 %v1648_v46 }
 0x1d7   : > { %vm1232_vm10 = vcmp.gt.f32.partialorder %v1212_v33, 0.0  ;;  %v1252_v62 = vmul.f32 0.01, %v1212_v33 }
 0x1d8   : > { %1470 = vrot.lane.b32.xlu1 %v1437_v19, %s2735_s29  ;;  %1558 = vrot.lane.b32.xlu2 %v1525_v3, %s2736_s25 }
 0x1d9   : > { %v1272_v9 = vsel %vm1232_vm10, %v1212_v33, %v1252_v62  ;;  %1556 = vrot.lane.b32.xlu0 %v1523_v31, %s2736_s25  ;;  %v1866_v31 = vld [vmem:[%s4044_s4 + $0x40] sm:$0xff] }
 0x1da   : > { %v1331_v10 = vrot.slane %v1272_v9, 7  ;;  %v1157_v11 = vpop.f32.mrf.mxu2  ;;  %1886 = vmatpush.msrb.mxu0 %v1866_v31 }
 0x1db   : > { %v1189_v14 = vadd.f32 %v1157_v11, %v1041_v5 }
 0x1dc   : > { %v3406_v17 = vsel %vm1311_vm8, %v1330_v54, %v1331_v10  ;;  %v1388_v15 = vsel %vm1311_vm8, %v1331_v10, 0.0 }
 0x1dd   : > { %v1213_v16 = vadd.f32 %v3253_v2, %v1189_v14  ;;  %v1527_v34 = vrot.slane %v3406_v17, 2  ;;  %v1439_v37 = vrot.slane %v3406_v17, 1  ;;  %v1441_v20 = vrot.slane %v1388_v15, 1 }
 0x1de   : > { %v1529_v56 = vrot.slane %v1388_v15, 2 }
 0x1df   : > { %vm1233_vm11 = vcmp.gt.f32.partialorder %v1213_v16, 0.0  ;;  %v1253_v55 = vmul.f32 0.01, %v1213_v16  ;;  %v1528_v39 = vsel %vm644_vm1, %v1526_v23, %v1527_v34  ;;  %v1442_v48 = vsel %vm533_vm0, %v1439_v37, %v1441_v20 }
 0x1e0   : > { %1560 = vrot.lane.b32.xlu1 %v1528_v39, %s2736_s25  ;;  %1474 = vrot.lane.b32.xlu2 %v1442_v48, %s2735_s29  ;;  %v1440_v60 = vsel %vm533_vm0, %v1438_v59, %v1439_v37  ;;  %v1530_v33 = vsel %vm644_vm1, %v1527_v34, %v1529_v56  ;;  %v1865_v37 = vld [vmem:[%s4044_s4 + $0x38] sm:$0xff]  ;;  %v1864_v48 = vld [vmem:[%s4044_s4 + $0x30] sm:$0xff] }
 0x1e1   : > { %1472 = vrot.lane.b32.xlu0 %v1440_v60, %s2735_s29  ;;  %v1273_v8 = vsel %vm1233_vm11, %v1213_v16, %v1253_v55  ;;  %1887 = vmatpush.msrb.mxu0 %v1865_v37 }
 0x1e2   : > { %v1160_v52 = vpop.f32.mrf.mxu2  ;;  %v1333_v54 = vrot.slane %v1273_v8, 7 }
 0x1e3   : > { %v1190_v12 = vadd.f32 %v1160_v52, %v1044_v50  ;;  %1888 = vmatpush.msrb.mxu0 %v1864_v48 }
 0x1e4   : > { %v3434_v26 = vsel %vm1311_vm8, 0.0, %v1333_v54 }
 0x1e5   : > { %v1214_v21 = vadd.f32 %v3253_v2, %v1190_v12  ;;  %v1531_v9 = vrot.slane %v3434_v26, 2  ;;  %v1443_v14 = vrot.slane %v3434_v26, 1 }
 0x1e7   : > { %vm1234_vm12 = vcmp.gt.f32.partialorder %v1214_v21, 0.0  ;;  %v1254_v29 = vmul.f32 0.01, %v1214_v21 }
 0x1e9   : > { %v1274_v40 = vsel %vm1234_vm12, %v1214_v21, %v1254_v29  ;;  %1562 = vrot.lane.b32.xlu0 %v1530_v33, %s2736_s25 }
 0x1ea   : > { %v1334_v62 = vrot.slane %v1274_v40, 7  ;;  %v1163_v19 = vpop.f32.mrf.mxu2 }
 0x1eb   : > { %v1191_v3 = vadd.f32 %v1163_v19, %v1047_v47  ;;  %v1455_v40 = vpop.permute.xlu2 %1454 }
 0x1ec   : > { %v3440_v5 = vsel %vm1311_vm8, %v1333_v54, %v1334_v62  ;;  %v1389_v25 = vsel %vm1311_vm8, %v1334_v62, 0.0  ;;  %v1587_v31 = vsel %vm776_vm4, %v3281_v24, %v1455_v40 }
 0x1ed   : > { %v1215_v49 = vadd.f32 %v3253_v2, %v1191_v3  ;;  %v1532_v10 = vrot.slane %v3440_v5, 2  ;;  %v1444_v11 = vrot.slane %v3440_v5, 1  ;;  %v1446_v13 = vrot.slane %v1389_v25, 1 }
 0x1ee   : > { %v1534_v39 = vrot.slane %v1389_v25, 2  ;;  %v3486_v25 = vsel %vm1311_vm8, 0.0, %v1312_v4 }
 0x1ef   : > { %vm1235_vm13 = vcmp.gt.f32.partialorder %v1215_v49, 0.0  ;;  %v1255_v23 = vmul.f32 0.01, %v1215_v49  ;;  %v1533_v15 = vsel %vm644_vm1, %v1531_v9, %v1532_v10  ;;  %v1447_v16 = vsel %vm533_vm0, %v1444_v11, %v1446_v13 }
 0x1f0   : > { %1564 = vrot.lane.b32.xlu2 %v1533_v15, %s2736_s25  ;;  %v1445_v34 = vsel %vm533_vm0, %v1443_v14, %v1444_v11  ;;  %v1535_v8 = vsel %vm644_vm1, %v1532_v10, %v1534_v39  ;;  %v1409_v11 = vrot.slane %v3271_v42, 1  ;;  %v3495_v13 = vsel %vm1311_vm8, 0.0, %v1315_v18 }
 0x1f1   : > { %1478 = vrot.lane.b32.xlu0 %v1447_v16, %s2735_s29  ;;  %1476 = vrot.lane.b32.xlu1 %v1445_v34, %s2735_s29  ;;  %v1275_v20 = vsel %vm1235_vm13, %v1215_v49, %v1255_v23  ;;  %v1408_v14 = vrot.slane %v3486_v25, 1  ;;  %v1413_v61 = vrot.slane %v3495_v13, 1  ;;  %v1382_v18 = vsel %vm1311_vm8, %v1313_v0, 0.0 }
 0x1f2   : > { %v1166_v59 = vpop.f32.mrf.mxu2  ;;  %v1336_v60 = vrot.slane %v1275_v20, 7  ;;  %v1497_v15 = vrot.slane %v3271_v42, 2  ;;  %v1411_v16 = vrot.slane %v1382_v18, 1  ;;  %v1496_v34 = vrot.slane %v3486_v25, 2 }
 0x1f3   : > { %v1192_v55 = vadd.f32 %v1166_v59, %v3238_v36  ;;  %v1410_v23 = vsel %vm533_vm0, %v1408_v14, %v1409_v11  ;;  %v1415_v1 = vsel %vm533_vm0, %v1413_v61, %v1414_v30  ;;  %v1501_v37 = vrot.slane %v3495_v13, 2 }
 0x1f4   : > { %v3465_v46 = vsel %vm1311_vm8, 0.0, %v1336_v60  ;;  %v1498_v20 = vsel %vm644_vm1, %v1496_v34, %v1497_v15  ;;  %v1412_v63 = vsel %vm533_vm0, %v1409_v11, %v1411_v16  ;;  %v1499_v39 = vrot.slane %v1382_v18, 2 }
 0x1f5   : > { %v1216_v50 = vadd.f32 %v3253_v2, %v1192_v55  ;;  %v1622_v56 = vrot.slane %v3465_v46, 1  ;;  %v1633_v29 = vrot.slane %v3465_v46, 2  ;;  %v1503_v59 = vsel %vm644_vm1, %v1501_v37, %v1502_v38 }
 0x1f6   : > { %v1500_v38 = vsel %vm644_vm1, %v1497_v15, %v1499_v39 }
 0x1f7   : > { %vm1236_vm14 = vcmp.gt.f32.partialorder %v1216_v50, 0.0  ;;  %v1256_v51 = vmul.f32 0.01, %v1216_v50 }
 0x1f9   : > { %v1276_v52 = vsel %vm1236_vm14, %v1216_v50, %v1256_v51  ;;  %1566 = vrot.lane.b32.xlu1 %v1535_v8, %s2736_s25 }
 0x1fa   : > { %v1337_v36 = vrot.slane %v1276_v52, 7  ;;  %v1545_v30 = vpop.permute.xlu2 %1544 }
 0x1fc   : > { %v3468_v12 = vsel %vm1311_vm8, %v1336_v60, %v1337_v36  ;;  %v1390_v54 = vsel %vm1311_vm8, %v1337_v36, 0.0 }
 0x1fd   : > { %v1623_v21 = vrot.slane %v3468_v12, 1  ;;  %v1634_v33 = vrot.slane %v3468_v12, 2  ;;  %v1625_v47 = vrot.slane %v1390_v54, 1  ;;  %v1636_v10 = vrot.slane %v1390_v54, 2 }
 0x1ff   : > { %v1624_v62 = vsel %vm533_vm0, %v1622_v56, %v1623_v21  ;;  %v1635_v19 = vsel %vm644_vm1, %v1633_v29, %v1634_v33  ;;  %v1626_v3 = vsel %vm533_vm0, %v1623_v21, %v1625_v47  ;;  %v1637_v4 = vsel %vm644_vm1, %v1634_v33, %v1636_v10  ;;  %v1619_v10 = vld [vmem:[%s4044_s4 + $0x10] sm:$0xff] }
 0x200   : > { %1627 = vrot.lane.b32.xlu2 %v1624_v62, %s2735_s29  ;;  %1638 = vrot.lane.b32.xlu0 %v1635_v19, %s2736_s25 }
 0x201   : > { %1629 = vrot.lane.b32.xlu1 %v1626_v3, %s2735_s29  ;;  %1784 = vmatpush.msrb.mxu3 %v1619_v10 }
 0x202   : > { %v1543_v9 = vpop.permute.xlu0 %1542 }
 0x203   : > { %v3489_v49 = vsel %vm1600_vm15, %v1587_v31, %v1543_v9 }
 0x204   : > { %2574 = vmatmul.msk.f32.vlgmr.msra.gmra.mxu3 %vm1651_vm2, %v3489_v49 }
 0x208   : > { %1640 = vrot.lane.b32.xlu2 %v1637_v4, %s2736_s25  ;;  %1448 = vrot.lane.b32.xlu0 %v1410_v23, %s2735_s29 }
 0x209   : > { %1452 = vrot.lane.b32.xlu1 %v1415_v1, %s2735_s29 }
 0x20a   : > { %v1461_v51 = vpop.permute.xlu2 %1460 }
 0x20b   : > { %v1590_v8 = vsel %vm776_vm4, %v3318_v35, %v1461_v51 }
 0x210   : > { %1536 = vrot.lane.b32.xlu2 %v1498_v20, %s2736_s25  ;;  %1540 = vrot.lane.b32.xlu0 %v1503_v59, %s2736_s25 }
 0x211   : > { %1450 = vrot.lane.b32.xlu1 %v1412_v63, %s2735_s29 }
 0x212   : > { %v1457_v0 = vpop.permute.xlu1 %1456  ;;  %v1551_v56 = vpop.permute.xlu2 %1550 }
 0x213   : > { %v1588_v55 = vsel %vm776_vm4, %v3297_v53, %v1457_v0  ;;  %v1459_v24 = vpop.permute.xlu0 %1458 }
 0x214   : > { %v3526_v48 = vsel %vm1600_vm15, %v1588_v55, %v1545_v30  ;;  %v1589_v60 = vsel %vm776_vm4, %v3300_v58, %v1459_v24  ;;  %v1617_v55 = vld [vmem:[%s4044_s4] sm:$0xff] }
 0x215   : > { %2575 = vmatmul.msk.f32.gmra.mxu3 %vm1651_vm2, %v3526_v48  ;;  %2605 = vmatmul.msk.f32.vlgmr.msrb.gmra.mxu0 %vm1651_vm2, %v3526_v48 }
 0x218   : > { %1538 = vrot.lane.b32.xlu2 %v1500_v38, %s2736_s25 }
 0x21a   : > { %v1547_v50 = vpop.permute.xlu1 %1546  ;;  %v1067_v35 = vpop.permute.xlu2 %1066 }
 0x21b   : > { %v3537_v53 = vsel %vm1600_vm15, %v1589_v60, %v1547_v50 }
 0x21d   : > { %2576 = vmatmul.msk.f32.gmra.mxu3 %vm1651_vm2, %v3537_v53  ;;  %2606 = vmatmul.msk.f32.gmra.mxu0 %vm1651_vm2, %v3537_v53 }
 0x222   : > { %v1549_v52 = vpop.permute.xlu0 %1548  ;;  %v1555_v19 = vpop.permute.xlu2 %1554 }
 0x223   : > { %v3546_v36 = vsel %vm1600_vm15, %v1590_v8, %v1549_v52  ;;  %v1463_v58 = vpop.permute.xlu1 %1462 }
 0x224   : > { %v1591_v54 = vsel %vm776_vm4, %v3321_v44, %v1463_v58  ;;  %v1083_v44 = vsel %vm755_vm3, %v3337_v6, %v1067_v35 }
 0x225   : > { %2577 = vmatmul.msk.f32.gmra.mxu3 %vm1651_vm2, %v3546_v36  ;;  %2607 = vmatmul.msk.f32.gmra.mxu0 %vm1651_vm2, %v3546_v36  ;;  %v3555_v21 = vsel %vm1600_vm15, %v1591_v54, %v1551_v56 }
 0x22a   : > { %v1469_v61 = vpop.permute.xlu2 %1468 }
 0x22b   : > { %v1594_v4 = vsel %vm776_vm4, %v3375_v22, %v1469_v61 }
 0x22d   : > { %2578 = vmatmul.msk.f32.gmra.mxu3 %vm1651_vm2, %v3555_v21  ;;  %2608 = vmatmul.msk.f32.gmra.mxu0 %vm1651_vm2, %v3555_v21 }
 0x232   : > { %v1553_v29 = vpop.permute.xlu1 %1552  ;;  %v1559_v15 = vpop.permute.xlu2 %1558 }
 0x233   : > { %v1465_v33 = vpop.permute.xlu0 %1464 }
 0x234   : > { %v1592_v47 = vsel %vm776_vm4, %v3347_v57, %v1465_v33 }
 0x235   : > { %v3564_v40 = vsel %vm1600_vm15, %v1592_v47, %v1553_v29 }
 0x236   : > { %2579 = vmatmul.msk.f32.gmra.mxu3 %vm1651_vm2, %v3564_v40  ;;  %2609 = vmatmul.msk.f32.gmra.mxu0 %vm1651_vm2, %v3564_v40 }
 0x23a   : > { %v1467_v62 = vpop.permute.xlu1 %1466 }
 0x23b   : > { %v1078_v3 = vpop.permute.xlu0 %1077  ;;  %v1593_v31 = vsel %vm776_vm4, %v3351_v27, %v1467_v62 }
 0x23c   : > { %v1085_v57 = vsel %vm776_vm4, %v1083_v44, %v1078_v3  ;;  %v3576_v9 = vsel %vm1600_vm15, %v1593_v31, %v1555_v19 }
 0x23d   : > { %2571 = vmatmul.msk.f32.gmra.mxu2 %vm830_vm5, %v1085_v57 }
 0x23e   : > { %2580 = vmatmul.msk.f32.gmra.mxu3 %vm1651_vm2, %v3576_v9  ;;  %2610 = vmatmul.msk.f32.gmra.mxu0 %vm1651_vm2, %v3576_v9 }
 0x242   : > { %v1080_v6 = vpop.permute.xlu1 %1079 }
 0x243   : > { %v1069_v27 = vpop.permute.xlu0 %1068 }
 0x244   : > { %v1084_v11 = vsel %vm755_vm3, %v3340_v7, %v1069_v27 }
 0x245   : > { %v1086_v14 = vsel %vm776_vm4, %v1084_v11, %v1080_v6 }
 0x246   : > { %2572 = vmatmul.msk.f32.gmra.mxu2 %vm830_vm5, %v1086_v14 }
 0x24a   : > { %v1471_v18 = vpop.permute.xlu1 %1470 }
 0x24b   : > { %v1557_v23 = vpop.permute.xlu0 %1556  ;;  %v1595_v7 = vsel %vm776_vm4, %v3378_v32, %v1471_v18  ;;  %v1475_v32 = vpop.permute.xlu2 %1474 }
 0x24c   : > { %v3593_v1 = vsel %vm1600_vm15, %v1594_v4, %v1557_v23  ;;  %v3602_v16 = vsel %vm1600_vm15, %v1595_v7, %v1559_v15  ;;  %v1597_v63 = vsel %vm776_vm4, %v3406_v17, %v1475_v32 }
 0x24d   : > { %2581 = vmatmul.msk.f32.gmra.mxu3 %vm1651_vm2, %v3593_v1  ;;  %2611 = vmatmul.msk.f32.gmra.mxu0 %vm1651_vm2, %v3593_v1 }
 0x252   : > { %v1561_v37 = vpop.permute.xlu1 %1560 }
 0x253   : > { %v1473_v22 = vpop.permute.xlu0 %1472  ;;  %v1565_v24 = vpop.permute.xlu2 %1564 }
 0x254   : > { %v1596_v34 = vsel %vm776_vm4, %v3400_v43, %v1473_v22  ;;  %v1618_v43 = vld [vmem:[%s4044_s4 + $0x8] sm:$0xff] }
 0x255   : > { %2582 = vmatmul.msk.f32.gmra.mxu3 %vm1651_vm2, %v3602_v16  ;;  %2612 = vmatmul.msk.f32.gmra.mxu0 %vm1651_vm2, %v3602_v16  ;;  %v3611_v20 = vsel %vm1600_vm15, %v1596_v34, %v1561_v37 }
 0x256   : > { %1785 = vmatpush.msrb.mxu3 %v1618_v43 }
 0x258   : > { %1786 = vmatpush.msrb.mxu3 %v1617_v55 }
 0x25b   : > { %v1563_v59 = vpop.permute.xlu0 %1562 }
 0x25c   : > { %v3620_v30 = vsel %vm1600_vm15, %v1597_v63, %v1563_v59 }
 0x25d   : > { %2583 = vmatmul.msk.f32.gmra.mxu3 %vm1651_vm2, %v3611_v20  ;;  %2613 = vmatmul.msk.f32.gmra.mxu0 %vm1651_vm2, %v3611_v20 }
 0x263   : > { %v1477_v0 = vpop.permute.xlu1 %1476  ;;  %v1479_v39 = vpop.permute.xlu0 %1478 }
 0x264   : > { %v1598_v17 = vsel %vm776_vm4, %v3434_v26, %v1477_v0  ;;  %v1599_v51 = vsel %vm776_vm4, %v3440_v5, %v1479_v39  ;;  %v1628_v26 = vpop.permute.xlu2 %1627 }
 0x265   : > { %2584 = vmatmul.msk.f32.gmra.mxu3 %vm1651_vm2, %v3620_v30  ;;  %2614 = vmatmul.msk.f32.gmra.mxu0 %vm1651_vm2, %v3620_v30  ;;  %v3635_v60 = vsel %vm1600_vm15, %v1598_v17, %v1565_v24  ;;  %v1644_v56 = vsel %vm776_vm4, %v3465_v46, %v1628_v26 }
 0x26b   : > { %v1567_v38 = vpop.permute.xlu1 %1566 }
 0x26c   : > { %v3644_v8 = vsel %vm1600_vm15, %v1599_v51, %v1567_v38  ;;  %v1641_v5 = vpop.permute.xlu2 %1640 }
 0x26d   : > { %2585 = vmatmul.msk.f32.gmra.mxu3 %vm1651_vm2, %v3635_v60  ;;  %2615 = vmatmul.msk.f32.gmra.mxu0 %vm1651_vm2, %v3635_v60 }
 0x272   : > { %v1639_v50 = vpop.permute.xlu0 %1638 }
 0x273   : > { %v1630_v52 = vpop.permute.xlu1 %1629  ;;  %v1646_v54 = vsel %vm1600_vm15, %v1644_v56, %v1639_v50 }
 0x274   : > { %v1645_v29 = vsel %vm776_vm4, %v3468_v12, %v1630_v52  ;;  %v1537_v62 = vpop.permute.xlu2 %1536 }
 0x275   : > { %2586 = vmatmul.msk.f32.gmra.mxu3 %vm1651_vm2, %v3644_v8  ;;  %2616 = vmatmul.msk.f32.gmra.mxu0 %vm1651_vm2, %v3644_v8  ;;  %v1647_v46 = vsel %vm1600_vm15, %v1645_v29, %v1641_v5 }
 0x27a   : > { %v1449_v58 = vpop.permute.xlu0 %1448 }
 0x27b   : > { %v1453_v35 = vpop.permute.xlu1 %1452  ;;  %v1584_v19 = vsel %vm776_vm4, %v3486_v25, %v1449_v58 }
 0x27c   : > { %v1586_v33 = vsel %vm776_vm4, %v3495_v13, %v1453_v35  ;;  %v1601_v12 = vsel %vm1600_vm15, %v1584_v19, %v1537_v62  ;;  %v1539_v57 = vpop.permute.xlu2 %1538 }
 0x27d   : > { %2587 = vmatmul.msk.f32.gmra.mxu3 %vm1651_vm2, %v1646_v54  ;;  %2617 = vmatmul.msk.f32.gmra.mxu0 %vm1651_vm2, %v1646_v54 }
 0x282   : > { %v1541_v47 = vpop.permute.xlu0 %1540 }
 0x283   : > { %v1603_v44 = vsel %vm1600_vm15, %v1586_v33, %v1541_v47  ;;  %v1451_v13 = vpop.permute.xlu1 %1450 }
 0x284   : > { %2573 = vmatmul.msk.f32.vlgmr.msrb.gmra.mxu2 %vm1651_vm2, %v1603_v44  ;;  %v1585_v31 = vsel %vm776_vm4, %v3271_v42, %v1451_v13 }
 0x285   : > { %2588 = vmatmul.msk.f32.gmra.mxu3 %vm1651_vm2, %v1647_v46  ;;  %2618 = vmatmul.msk.f32.gmra.mxu0 %vm1651_vm2, %v1647_v46  ;;  %v1602_v10 = vsel %vm1600_vm15, %v1585_v31, %v1539_v57 }
 0x287   : > { %v3668_v3 = vpop.f32.mrf.mxu3 }
 0x28d   : > { %2589 = vmatmul.msk.f32.vlgmr.msrb.gmra.mxu3 %vm1651_vm2, %v1601_v12 }
 0x292   : > { %v1890_v56 = vpop.f32.mrf.mxu0 }
 0x295   : > { %2590 = vmatmul.msk.f32.gmra.mxu3 %vm1651_vm2, %v1602_v10 }
 0x298   : > { %v3674_v6 = vpop.f32.mrf.mxu3 }
 0x29a   : > { %v1893_v5 = vpop.f32.mrf.mxu0 }
 0x29d   : > { %2591 = vmatmul.msk.f32.gmra.mxu3 %vm1651_vm2, %v1603_v44 }
 0x2a0   : > { %v3677_v25 = vpop.f32.mrf.mxu3 }
 0x2a5   : > { %2592 = vmatmul.msk.f32.gmra.mxu3 %vm1651_vm2, %v3489_v49 }
 0x2a8   : > { %v3681_v27 = vpop.f32.mrf.mxu3 }
 0x2ad   : > { %2593 = vmatmul.msk.f32.gmra.mxu3 %vm1651_vm2, %v3526_v48 }
 0x2b0   : > { %v3685_v42 = vpop.f32.mrf.mxu3 }
 0x2b5   : > { %2594 = vmatmul.msk.f32.gmra.mxu3 %vm1651_vm2, %v3537_v53  ;;  %v1288_v53 = vstv %s1284_s24 }
 0x2b9   : > { %v3691_v11 = vpop.f32.mrf.mxu3 }
 0x2bd   : > { %2595 = vmatmul.msk.f32.gmra.mxu3 %vm1651_vm2, %v3546_v36  ;;  %v1056_v36 = vadd.f32 %v3246_v45, %v3226_v28 }
 0x2c0   : > { %v1169_v14 = vpop.f32.mrf.mxu2 }
 0x2c1   : > { %v1193_v49 = vadd.f32 %v1169_v14, %v3242_v41  ;;  %v3701_v23 = vpop.f32.mrf.mxu3  ;;  %v2038_v41 = vld [vmem:[%s4046_s6] sm:$0xff] }
 0x2c2   : > { %2106 = vmatpush.msrb.mxu1 %v2038_v41 }
 0x2c3   : > { %v1217_v61 = vadd.f32 %v3253_v2, %v1193_v49 }
 0x2c5   : > { %vm1237_vm5 = vcmp.gt.f32.partialorder %v1217_v61, 0.0  ;;  %v1257_v48 = vmul.f32 0.01, %v1217_v61  ;;  %2596 = vmatmul.msk.f32.gmra.mxu3 %vm1651_vm2, %v3555_v21 }
 0x2c7   : > { %v1277_v4 = vsel %vm1237_vm5, %v1217_v61, %v1257_v48 }
 0x2c8   : > { %v1289_v7 = vmul.f32 %v1288_v53, %v1277_v4 }
 0x2c9   : > { %v1172_v18 = vpop.f32.mrf.mxu2 }
 0x2ca   : > { %v1194_v15 = vadd.f32 %v1172_v18, %v1056_v36  ;;  %v1339_v21 = vrot.slane %v1289_v7, 7 }
 0x2cc   : > { %v1218_v22 = vadd.f32 %v3253_v2, %v1194_v15  ;;  %v3712_v32 = vsel %vm1311_vm8, 0.0, %v1339_v21 }
 0x2cd   : > { %2597 = vmatmul.msk.f32.gmra.mxu3 %vm1651_vm2, %v3564_v40  ;;  %v1849_v2 = vrot.slane %v3712_v32, 2  ;;  %v1838_v17 = vrot.slane %v3712_v32, 1 }
 0x2ce   : > { %vm1238_vm6 = vcmp.gt.f32.partialorder %v1218_v22, 0.0  ;;  %v1258_v34 = vmul.f32 0.01, %v1218_v22 }
 0x2d0   : > { %v1278_v37 = vsel %vm1238_vm6, %v1218_v22, %v1258_v34  ;;  %v3709_v28 = vpop.f32.mrf.mxu3 }
 0x2d1   : > { %v1290_v45 = vmul.f32 %v1288_v53, %v1278_v37 }
 0x2d3   : > { %v1340_v59 = vrot.slane %v1290_v45, 7 }
 0x2d5   : > { %2598 = vmatmul.msk.f32.gmra.mxu3 %vm1651_vm2, %v3576_v9  ;;  %v3717_v63 = vsel %vm1311_vm8, %v1339_v21, %v1340_v59  ;;  %v1391_v40 = vsel %vm1311_vm8, %v1340_v59, 0.0 }
 0x2d6   : > { %v1850_v0 = vrot.slane %v3717_v63, 2  ;;  %v1839_v43 = vrot.slane %v3717_v63, 1  ;;  %v1841_v55 = vrot.slane %v1391_v40, 1  ;;  %v1852_v50 = vrot.slane %v1391_v40, 2 }
 0x2d8   : > { %v3724_v39 = vpop.f32.mrf.mxu3  ;;  %v1851_v24 = vsel %vm644_vm1, %v1849_v2, %v1850_v0  ;;  %v1842_v9 = vsel %vm533_vm0, %v1839_v43, %v1841_v55  ;;  %v1840_v38 = vsel %vm533_vm0, %v1838_v17, %v1839_v43  ;;  %v1853_v26 = vsel %vm644_vm1, %v1850_v0, %v1852_v50 }
 0x2d9   : > { %1854 = vrot.lane.b32.xlu1 %v1851_v24, %s2736_s25  ;;  %1845 = vrot.lane.b32.xlu2 %v1842_v9, %s2735_s29 }
 0x2da   : > { %1843 = vrot.lane.b32.xlu0 %v1840_v38, %s2735_s29  ;;  %s3829_s29 = scalar_lea.vmem %s4048_s8, %s2504_s11 }
 0x2dd   : > { %2599 = vmatmul.msk.f32.gmra.mxu3 %vm1651_vm2, %v3593_v1 }
 0x2e0   : > { %v3734_v51 = vpop.f32.mrf.mxu3 }
 0x2e2   : > { %1856 = vrot.lane.b32.xlu0 %v1853_v26, %s2736_s25  ;;  %s2508_s25 = sshll.u32 %s4062_s14, 1 }
 0x2e3   : > { %s3981_s28 = sadd.s32 %s2508_s25, %s2830_s20 }
 0x2e4   : > { %s459_s11 = scalar_lea.vmem %s4049_s9, %s3981_s28  ;;  %s466_s12 = scalar_lea.vmem %s4050_s10, %s3981_s28 }
 0x2e5   : > { %2600 = vmatmul.msk.f32.gmra.mxu3 %vm1651_vm2, %v3602_v16 }
 0x2e8   : > { %v3740_v52 = vpop.f32.mrf.mxu3 }
 0x2ed   : > { %2601 = vmatmul.msk.f32.gmra.mxu3 %vm1651_vm2, %v3611_v20  ;;  %v1896_v20 = vpop.f32.mrf.mxu0 }
 0x2f0   : > { %v3744_v58 = vpop.f32.mrf.mxu3 }
 0x2f5   : > { %2602 = vmatmul.msk.f32.gmra.mxu3 %vm1651_vm2, %v3620_v30  ;;  %v3761_v30 = vld [vmem:[%s4045_s5] ss:$0 sm:$0xff]  ;;  %v1899_v46 = vpop.f32.mrf.mxu0 }
 0x2f8   : > { %v3748_v1 = vpop.f32.mrf.mxu3 }
 0x2fd   : > { %2603 = vmatmul.msk.f32.gmra.mxu3 %vm1651_vm2, %v3635_v60  ;;  %v1902_v49 = vpop.f32.mrf.mxu0 }
 0x300   : > { %v3752_v54 = vpop.f32.mrf.mxu3 }
 0x305   : > { %2604 = vmatmul.msk.f32.gmra.mxu3 %vm1651_vm2, %v3644_v8  ;;  %v1905_v7 = vpop.f32.mrf.mxu0 }
 0x307   : > { %v1717_v35 = vpop.f32.mrf.mxu2 }
 0x308   : > { %v3756_v16 = vpop.f32.mrf.mxu3 }
 0x30d   : > { %v1908_v37 = vpop.f32.mrf.mxu0 }
 0x310   : > { %v1788_v29 = vpop.f32.mrf.mxu3 }
 0x311   : > { %v1789_v33 = vadd.f32 %v1788_v29, %v1717_v35 }
 0x313   : > { %v1938_v47 = vadd.f32 %v1890_v56, %v1789_v33 }
 0x315   : > { %v1958_v60 = vadd.f32 %v3761_v30, %v1938_v47  ;;  %v1911_v55 = vpop.f32.mrf.mxu0 }
 0x317   : > { %vm1974_vm0 = vcmp.gt.f32.partialorder %v1958_v60, 0.0  ;;  %v1990_v44 = vmul.f32 0.01, %v1958_v60 }
 0x318   : > { %v1791_v62 = vpop.f32.mrf.mxu3 }
 0x319   : > { %v1792_v8 = vadd.f32 %v1791_v62, %v3668_v3  ;;  %v2006_v19 = vsel %vm1974_vm0, %v1958_v60, %v1990_v44 }
 0x31a   : > { %2621 = vmatmul.msk.f32.vlgmr.msrb.gmra.mxu1 %vm776_vm4, %v2006_v19 }
 0x31b   : > { %v1939_v12 = vadd.f32 %v1893_v5, %v1792_v8 }
 0x31d   : > { %v1959_v13 = vadd.f32 %v3761_v30, %v1939_v12  ;;  %v1914_v26 = vpop.f32.mrf.mxu0 }
 0x31f   : > { %vm1975_vm1 = vcmp.gt.f32.partialorder %v1959_v13, 0.0  ;;  %v1991_v31 = vmul.f32 0.01, %v1959_v13 }
 0x320   : > { %v1794_v57 = vpop.f32.mrf.mxu3 }
 0x321   : > { %v1795_v10 = vadd.f32 %v1794_v57, %v3674_v6  ;;  %v2007_v14 = vsel %vm1975_vm1, %v1959_v13, %v1991_v31 }
 0x322   : > { %2622 = vmatmul.msk.f32.gmra.mxu1 %vm776_vm4, %v2007_v14 }
 0x323   : > { %v1940_v61 = vadd.f32 %v1896_v20, %v1795_v10 }
 0x325   : > { %v1960_v48 = vadd.f32 %v3761_v30, %v1940_v61  ;;  %v1917_v19 = vpop.f32.mrf.mxu0 }
 0x327   : > { %vm1976_vm8 = vcmp.gt.f32.partialorder %v1960_v48, 0.0  ;;  %v1992_v3 = vmul.f32 0.01, %v1960_v48 }
 0x328   : > { %v1797_v4 = vpop.f32.mrf.mxu3 }
 0x329   : > { %v1798_v53 = vadd.f32 %v1797_v4, %v3677_v25  ;;  %v2008_v36 = vsel %vm1976_vm8, %v1960_v48, %v1992_v3 }
 0x32a   : > { %2623 = vmatmul.msk.f32.gmra.mxu1 %vm776_vm4, %v2008_v36 }
 0x32b   : > { %v1941_v18 = vadd.f32 %v1899_v46, %v1798_v53 }
 0x32d   : > { %v1961_v15 = vadd.f32 %v3761_v30, %v1941_v18  ;;  %v1920_v48 = vpop.f32.mrf.mxu0 }
 0x32f   : > { %vm1977_vm7 = vcmp.gt.f32.partialorder %v1961_v15, 0.0  ;;  %v1993_v6 = vmul.f32 0.01, %v1961_v15 }
 0x330   : > { %v1800_v41 = vpop.f32.mrf.mxu3 }
 0x331   : > { %v1801_v22 = vadd.f32 %v1800_v41, %v3681_v27  ;;  %v2009_v21 = vsel %vm1977_vm7, %v1961_v15, %v1993_v6 }
 0x332   : > { %2624 = vmatmul.msk.f32.gmra.mxu1 %vm776_vm4, %v2009_v21 }
 0x333   : > { %v1942_v34 = vadd.f32 %v1902_v49, %v1801_v22  ;;  %v1846_v62 = vpop.permute.xlu2 %1845 }
 0x334   : > { %v1861_v13 = vsel %vm776_vm4, %v3717_v63, %v1846_v62 }
 0x335   : > { %v1962_v45 = vadd.f32 %v3761_v30, %v1942_v34  ;;  %v1923_v15 = vpop.f32.mrf.mxu0 }
 0x337   : > { %vm1978_vm9 = vcmp.gt.f32.partialorder %v1962_v45, 0.0  ;;  %v1994_v25 = vmul.f32 0.01, %v1962_v45 }
 0x338   : > { %v1803_v59 = vpop.f32.mrf.mxu3 }
 0x339   : > { %v1804_v2 = vadd.f32 %v1803_v59, %v3685_v42  ;;  %v2010_v40 = vsel %vm1978_vm9, %v1962_v45, %v1994_v25 }
 0x33a   : > { %2625 = vmatmul.msk.f32.gmra.mxu1 %vm776_vm4, %v2010_v40 }
 0x33b   : > { %v1943_v0 = vadd.f32 %v1905_v7, %v1804_v2 }
 0x33d   : > { %v1963_v43 = vadd.f32 %v3761_v30, %v1943_v0 }
 0x33f   : > { %vm1979_vm10 = vcmp.gt.f32.partialorder %v1963_v43, 0.0  ;;  %v1995_v27 = vmul.f32 0.01, %v1963_v43 }
 0x340   : > { %v1806_v17 = vpop.f32.mrf.mxu3 }
 0x341   : > { %v1807_v24 = vadd.f32 %v1806_v17, %v3691_v11  ;;  %v2011_v9 = vsel %vm1979_vm10, %v1963_v43, %v1995_v27 }
 0x342   : > { %2626 = vmatmul.msk.f32.gmra.mxu1 %vm776_vm4, %v2011_v9 }
 0x343   : > { %v1944_v38 = vadd.f32 %v1908_v37, %v1807_v24  ;;  %v1926_v37 = vpop.f32.mrf.mxu0 }
 0x345   : > { %v1964_v50 = vadd.f32 %v3761_v30, %v1944_v38  ;;  %v2022_v38 = vld [vmem:[%s3817_s22] sm:$0xff] }
 0x347   : > { %vm1980_vm11 = vcmp.gt.f32.partialorder %v1964_v50, 0.0  ;;  %v1996_v42 = vmul.f32 0.01, %v1964_v50 }
 0x348   : > { %v1809_v56 = vpop.f32.mrf.mxu3 }
 0x349   : > { %v1810_v5 = vadd.f32 %v1809_v56, %v3701_v23  ;;  %v2012_v20 = vsel %vm1980_vm11, %v1964_v50, %v1996_v42  ;;  %v2023_v56 = vld [vmem:[%s3817_s22 + $0x8] sm:$0xff] }
 0x34a   : > { %2627 = vmatmul.msk.f32.gmra.mxu1 %vm776_vm4, %v2012_v20 }
 0x34b   : > { %v1945_v35 = vadd.f32 %v1911_v55, %v1810_v5  ;;  %v1855_v29 = vpop.permute.xlu1 %1854  ;;  %v1929_v27 = vpop.f32.mrf.mxu0 }
 0x34c   : > { %v1844_v33 = vpop.permute.xlu0 %1843 }
 0x34d   : > { %v1965_v11 = vadd.f32 %v3761_v30, %v1945_v35  ;;  %v1860_v47 = vsel %vm776_vm4, %v3712_v32, %v1844_v33 }
 0x34e   : > { %v1862_v60 = vsel %vm1600_vm15, %v1860_v47, %v1855_v29  ;;  %v2024_v29 = vld [vmem:[%s3817_s22 + $0x10] sm:$0xff] }
 0x34f   : > { %2619 = vmatmul.msk.f32.gmra.mxu0 %vm1651_vm2, %v1862_v60  ;;  %vm1981_vm12 = vcmp.gt.f32.partialorder %v1965_v11, 0.0  ;;  %v1997_v44 = vmul.f32 0.01, %v1965_v11  ;;  %v2025_v60 = vld [vmem:[%s3817_s22 + $0x18] sm:$0xff] }
 0x350   : > { %v1812_v46 = vpop.f32.mrf.mxu3 }
 0x351   : > { %v1813_v23 = vadd.f32 %v1812_v46, %v3709_v28  ;;  %v2013_v8 = vsel %vm1981_vm12, %v1965_v11, %v1997_v44 }
 0x352   : > { %2628 = vmatmul.msk.f32.gmra.mxu1 %vm776_vm4, %v2013_v8 }
 0x353   : > { %v1946_v12 = vadd.f32 %v1914_v26, %v1813_v23  ;;  %v2026_v23 = vld [vmem:[%s3817_s22 + $0x20] sm:$0xff] }
 0x354   : > { %v1857_v31 = vpop.permute.xlu0 %1856 }
 0x355   : > { %v1966_v32 = vadd.f32 %v3761_v30, %v1946_v12  ;;  %v1863_v57 = vsel %vm1600_vm15, %v1861_v13, %v1857_v31  ;;  %v2027_v13 = vld [vmem:[%s3817_s22 + $0x28] sm:$0xff] }
 0x357   : > { %2620 = vmatmul.msk.f32.gmra.mxu0 %vm1651_vm2, %v1863_v57  ;;  %vm1982_vm13 = vcmp.gt.f32.partialorder %v1966_v32, 0.0  ;;  %v1998_v10 = vmul.f32 0.01, %v1966_v32 }
 0x358   : > { %v1815_v14 = vpop.f32.mrf.mxu3 }
 0x359   : > { %v1816_v28 = vadd.f32 %v1815_v14, %v3724_v39  ;;  %v2014_v49 = vsel %vm1982_vm13, %v1966_v32, %v1998_v10  ;;  %v2028_v14 = vld [vmem:[%s3817_s22 + $0x30] sm:$0xff] }
 0x35a   : > { %2629 = vmatmul.msk.f32.gmra.mxu1 %vm776_vm4, %v2014_v49 }
 0x35b   : > { %v1947_v61 = vadd.f32 %v1917_v19, %v1816_v28 }
 0x35d   : > { %v1967_v3 = vadd.f32 %v3761_v30, %v1947_v61 }
 0x35f   : > { %vm1983_vm14 = vcmp.gt.f32.partialorder %v1967_v3, 0.0  ;;  %v1999_v63 = vmul.f32 0.01, %v1967_v3 }
 0x360   : > { %v1818_v4 = vpop.f32.mrf.mxu3 }
 0x361   : > { %v1819_v53 = vadd.f32 %v1818_v4, %v3734_v51  ;;  %v2015_v36 = vsel %vm1983_vm14, %v1967_v3, %v1999_v63 }
 0x362   : > { %2630 = vmatmul.msk.f32.gmra.mxu1 %vm776_vm4, %v2015_v36 }
 0x363   : > { %v1948_v18 = vadd.f32 %v1920_v48, %v1819_v53  ;;  %v2029_v53 = vld [vmem:[%s3817_s22 + $0x38] sm:$0xff] }
 0x365   : > { %v1968_v7 = vadd.f32 %v3761_v30, %v1948_v18 }
 0x367   : > { %vm1984_vm15 = vcmp.gt.f32.partialorder %v1968_v7, 0.0  ;;  %v2000_v39 = vmul.f32 0.01, %v1968_v7 }
 0x368   : > { %v1821_v6 = vpop.f32.mrf.mxu3 }
 0x369   : > { %v1822_v41 = vadd.f32 %v1821_v6, %v3740_v52  ;;  %v2016_v22 = vsel %vm1984_vm15, %v1968_v7, %v2000_v39 }
 0x36a   : > { %2631 = vmatmul.msk.f32.gmra.mxu1 %vm776_vm4, %v2016_v22 }
 0x36b   : > { %v1949_v21 = vadd.f32 %v1923_v15, %v1822_v41 }
 0x36d   : > { %v1969_v34 = vadd.f32 %v3761_v30, %v1949_v21 }
 0x36f   : > { %vm1985_vm2 = vcmp.gt.f32.partialorder %v1969_v34, 0.0  ;;  %v2001_v51 = vmul.f32 0.01, %v1969_v34 }
 0x370   : > { %v1824_v45 = vpop.f32.mrf.mxu3 }
 0x371   : > { %v1825_v25 = vadd.f32 %v1824_v45, %v3744_v58  ;;  %v2017_v59 = vsel %vm1985_vm2, %v1969_v34, %v2001_v51  ;;  %v2030_v34 = vld [vmem:[%s3817_s22 + $0x40] sm:$0xff] }
 0x372   : > { %2632 = vmatmul.msk.f32.gmra.mxu1 %vm776_vm4, %v2017_v59  ;;  %v2031_v59 = vld [vmem:[%s3817_s22 + $0x48] sm:$0xff] }
 0x373   : > { %v1950_v2 = vadd.f32 %v1926_v37, %v1825_v25 }
 0x375   : > { %v1970_v52 = vadd.f32 %v3761_v30, %v1950_v2 }
 0x377   : > { %vm1986_vm5 = vcmp.gt.f32.partialorder %v1970_v52, 0.0  ;;  %v2002_v40 = vmul.f32 0.01, %v1970_v52 }
 0x378   : > { %v1827_v0 = vpop.f32.mrf.mxu3 }
 0x379   : > { %v1828_v43 = vadd.f32 %v1827_v0, %v3748_v1  ;;  %v2018_v55 = vsel %vm1986_vm5, %v1970_v52, %v2002_v40  ;;  %v3822_v1 = vld [vmem:[%s4047_s7] ss:$0 sm:$0xff]  ;;  %v2032_v40 = vld [vmem:[%s3817_s22 + $0x50] sm:$0xff] }
 0x37a   : > { %2633 = vmatmul.msk.f32.gmra.mxu1 %vm776_vm4, %v2018_v55 }
 0x37b   : > { %v1951_v17 = vadd.f32 %v1929_v27, %v1828_v43  ;;  %v2033_v27 = vld [vmem:[%s3817_s22 + $0x58] sm:$0xff] }
 0x37d   : > { %v1971_v58 = vadd.f32 %v3761_v30, %v1951_v17 }
 0x37f   : > { %vm1987_vm6 = vcmp.gt.f32.partialorder %v1971_v58, 0.0  ;;  %v2003_v24 = vmul.f32 0.01, %v1971_v58 }
 0x380   : > { %v1830_v10 = vpop.f32.mrf.mxu3 }
 0x381   : > { %v2019_v9 = vsel %vm1987_vm6, %v1971_v58, %v2003_v24  ;;  %v1831_v48 = vadd.f32 %v1830_v10, %v3752_v54 }
 0x382   : > { %2634 = vmatmul.msk.f32.gmra.mxu1 %vm776_vm4, %v2019_v9  ;;  %v2034_v9 = vld [vmem:[%s3817_s22 + $0x60] sm:$0xff] }
 0x388   : > { %v1833_v18 = vpop.f32.mrf.mxu3 }
 0x389   : > { %v1834_v54 = vadd.f32 %v1833_v18, %v3756_v16 }
 0x397   : > { %v2108_v50 = vpop.f32.mrf.mxu1 }
 0x398   : > { %v2109_v42 = vadd.f32 %v3822_v1, %v2108_v50 }
 0x39a   : > { %v3831_v26 = vadd.f32 %v2109_v42, %v2022_v38 }
 0x39c   : > { %2279 = vst.msk [vmem:[%s3829_s29] sm:$0xff] %vm755_vm3, %v3831_v26 }
 0x39f   : > { %v2111_v5 = vpop.f32.mrf.mxu1 }
 0x3a0   : > { %v2112_v20 = vadd.f32 %v3822_v1, %v2111_v5 }
 0x3a2   : > { %v3838_v35 = vadd.f32 %v2112_v20, %v2023_v56  ;;  %v2035_v56 = vld [vmem:[%s3817_s22 + $0x68] sm:$0xff] }
 0x3a4   : > { %2280 = vst.msk [vmem:[%s3829_s29 + $0x8] sm:$0xff] %vm755_vm3, %v3838_v35 }
 0x3a7   : > { %v2114_v33 = vpop.f32.mrf.mxu1 }
 0x3a8   : > { %v2115_v11 = vadd.f32 %v3822_v1, %v2114_v33  ;;  %v2173_v33 = vsel %vm755_vm3, %v3838_v35, 0.0 }
 0x3aa   : > { %v3845_v47 = vadd.f32 %v2115_v11, %v2024_v29  ;;  %v2172_v11 = vsel %vm755_vm3, %v3831_v26, 0.0 }
 0x3ac   : > { %2281 = vst.msk [vmem:[%s3829_s29 + $0x10] sm:$0xff] %vm755_vm3, %v3845_v47 }
 0x3af   : > { %v2117_v44 = vpop.f32.mrf.mxu1 }
 0x3b0   : > { %v2118_v46 = vadd.f32 %v3822_v1, %v2117_v44  ;;  %v2174_v44 = vadd.f32 %v2173_v33, %v2172_v11 }
 0x3b2   : > { %v3852_v62 = vadd.f32 %v2118_v46, %v2025_v60  ;;  %v2175_v60 = vsel %vm755_vm3, %v3845_v47, 0.0 }
 0x3b4   : > { %2282 = vst.msk [vmem:[%s3829_s29 + $0x18] sm:$0xff] %vm755_vm3, %v3852_v62  ;;  %v2177_v46 = vsel %vm755_vm3, %v3852_v62, 0.0 }
 0x3b7   : > { %v2120_v8 = vpop.f32.mrf.mxu1 }
 0x3b8   : > { %v2121_v19 = vadd.f32 %v3822_v1, %v2120_v8 }
 0x3ba   : > { %v3859_v12 = vadd.f32 %v2121_v19, %v2026_v23  ;;  %v2176_v23 = vadd.f32 %v2175_v60, %v2174_v44 }
 0x3bc   : > { %2283 = vst.msk [vmem:[%s3829_s29 + $0x20] sm:$0xff] %vm755_vm3, %v3859_v12  ;;  %v2179_v8 = vsel %vm755_vm3, %v3859_v12, 0.0  ;;  %v2178_v19 = vadd.f32 %v2177_v46, %v2176_v23 }
 0x3bf   : > { %v2123_v31 = vpop.f32.mrf.mxu1 }
 0x3c0   : > { %v2124_v32 = vadd.f32 %v3822_v1, %v2123_v31  ;;  %v2180_v31 = vadd.f32 %v2179_v8, %v2178_v19 }
 0x3c2   : > { %v3866_v57 = vadd.f32 %v2124_v32, %v2027_v13 }
 0x3c4   : > { %2284 = vst.msk [vmem:[%s3829_s29 + $0x28] sm:$0xff] %vm755_vm3, %v3866_v57  ;;  %v2181_v13 = vsel %vm755_vm3, %v3866_v57, 0.0 }
 0x3c5   : > { %v2182_v10 = vadd.f32 %v2181_v13, %v2180_v31 }
 0x3c7   : > { %v2126_v28 = vpop.f32.mrf.mxu1 }
 0x3c8   : > { %v2127_v49 = vadd.f32 %v3822_v1, %v2126_v28 }
 0x3ca   : > { %v3873_v61 = vadd.f32 %v2127_v49, %v2028_v14 }
 0x3cc   : > { %2285 = vst.msk [vmem:[%s3829_s29 + $0x30] sm:$0xff] %vm755_vm3, %v3873_v61  ;;  %v1932_v3 = vpop.f32.mrf.mxu0  ;;  %v2183_v32 = vsel %vm755_vm3, %v3873_v61, 0.0 }
 0x3cd   : > { %v1952_v63 = vadd.f32 %v1932_v3, %v1831_v48  ;;  %v2184_v28 = vadd.f32 %v2183_v32, %v2182_v10 }
 0x3cf   : > { %v1972_v4 = vadd.f32 %v3761_v30, %v1952_v63  ;;  %v2129_v36 = vpop.f32.mrf.mxu1 }
 0x3d0   : > { %v2130_v7 = vadd.f32 %v3822_v1, %v2129_v36 }
 0x3d1   : > { %v2004_v15 = vmul.f32 0.01, %v1972_v4  ;;  %vm1988_vm0 = vcmp.gt.f32.partialorder %v1972_v4, 0.0 }
 0x3d2   : > { %v3882_v39 = vadd.f32 %v2130_v7, %v2029_v53 }
 0x3d3   : > { %v2020_v6 = vsel %vm1988_vm0, %v1972_v4, %v2004_v15  ;;  %v2036_v4 = vld [vmem:[%s3817_s22 + $0x70] sm:$0xff] }
 0x3d4   : > { %2286 = vst.msk [vmem:[%s3829_s29 + $0x38] sm:$0xff] %vm755_vm3, %v3882_v39  ;;  %v1935_v41 = vpop.f32.mrf.mxu0  ;;  %2635 = vmatmul.msk.f32.gmra.mxu1 %vm776_vm4, %v2020_v6  ;;  %v2185_v14 = vsel %vm755_vm3, %v3882_v39, 0.0 }
 0x3d5   : > { %v1953_v22 = vadd.f32 %v1935_v41, %v1834_v54  ;;  %v2186_v48 = vadd.f32 %v2185_v14, %v2184_v28 }
 0x3d7   : > { %v1973_v21 = vadd.f32 %v3761_v30, %v1953_v22  ;;  %v2132_v51 = vpop.f32.mrf.mxu1 }
 0x3d8   : > { %v2133_v37 = vadd.f32 %v3822_v1, %v2132_v51  ;;  %v2037_v51 = vld [vmem:[%s3817_s22 + $0x78] sm:$0xff] }
 0x3d9   : > { %v2005_v45 = vmul.f32 0.01, %v1973_v21  ;;  %vm1989_vm1 = vcmp.gt.f32.partialorder %v1973_v21, 0.0 }
 0x3da   : > { %v3892_v16 = vadd.f32 %v2133_v37, %v2030_v34 }
 0x3db   : > { %v2021_v25 = vsel %vm1989_vm1, %v1973_v21, %v2005_v45 }
 0x3dc   : > { %2287 = vst.msk [vmem:[%s3829_s29 + $0x40] sm:$0xff] %vm755_vm3, %v3892_v16  ;;  %2636 = vmatmul.msk.f32.gmra.mxu1 %vm776_vm4, %v2021_v25  ;;  %v2187_v49 = vsel %vm755_vm3, %v3892_v16, 0.0  ;;  %vm2295_vm4 = vcmask 24576  }
 0x3dd   : > { %v2188_v63 = vadd.f32 %v2187_v49, %v2186_v48 }
 0x3df   : > { %v2135_v30 = vpop.f32.mrf.mxu1 }
 0x3e0   : > { %v2136_v2 = vadd.f32 %v3822_v1, %v2135_v30 }
 0x3e2   : > { %v3900_v52 = vadd.f32 %v2136_v2, %v2031_v59 }
 0x3e4   : > { %2288 = vst.msk [vmem:[%s3829_s29 + $0x48] sm:$0xff] %vm755_vm3, %v3900_v52  ;;  %v2189_v3 = vsel %vm755_vm3, %v3900_v52, 0.0 }
 0x3e5   : > { %v2190_v7 = vadd.f32 %v2189_v3, %v2188_v63 }
 0x3e7   : > { %v2138_v0 = vpop.f32.mrf.mxu1 }
 0x3e8   : > { %v2139_v43 = vadd.f32 %v3822_v1, %v2138_v0 }
 0x3ea   : > { %v3907_v55 = vadd.f32 %v2139_v43, %v2032_v40 }
 0x3ec   : > { %2289 = vst.msk [vmem:[%s3829_s29 + $0x50] sm:$0xff] %vm755_vm3, %v3907_v55  ;;  %v2191_v36 = vsel %vm755_vm3, %v3907_v55, 0.0 }
 0x3ed   : > { %v2192_v6 = vadd.f32 %v2191_v36, %v2190_v7 }
 0x3ef   : > { %v2141_v17 = vpop.f32.mrf.mxu1 }
 0x3f0   : > { %v2142_v58 = vadd.f32 %v3822_v1, %v2141_v17 }
 0x3f2   : > { %v3914_v24 = vadd.f32 %v2142_v58, %v2033_v27 }
 0x3f4   : > { %2290 = vst.msk [vmem:[%s3829_s29 + $0x58] sm:$0xff] %vm755_vm3, %v3914_v24  ;;  %v2193_v15 = vsel %vm755_vm3, %v3914_v24, 0.0 }
 0x3f5   : > { %v2194_v22 = vadd.f32 %v2193_v15, %v2192_v6 }
 0x3f7   : > { %v2144_v38 = vpop.f32.mrf.mxu1 }
 0x3f8   : > { %v2145_v50 = vadd.f32 %v3822_v1, %v2144_v38 }
 0x3fa   : > { %v3921_v42 = vadd.f32 %v2145_v50, %v2034_v9 }
 0x3fc   : > { %2291 = vst.msk [vmem:[%s3829_s29 + $0x60] sm:$0xff] %vm755_vm3, %v3921_v42  ;;  %v2195_v41 = vsel %vm755_vm3, %v3921_v42, 0.0 }
 0x3fd   : > { %v2196_v34 = vadd.f32 %v2195_v41, %v2194_v22 }
 0x3ff   : > { %v2147_v5 = vpop.f32.mrf.mxu1 }
 0x400   : > { %v2148_v20 = vadd.f32 %v3822_v1, %v2147_v5 }
 0x402   : > { %v3928_v29 = vadd.f32 %v2148_v20, %v2035_v56 }
 0x404   : > { %2292 = vst.msk [vmem:[%s3829_s29 + $0x68] sm:$0xff] %vm755_vm3, %v3928_v29  ;;  %v2197_v21 = vsel %vm755_vm3, %v3928_v29, 0.0 }
 0x405   : > { %v2198_v59 = vadd.f32 %v2197_v21, %v2196_v34 }
 0x451   : > { %v2150_v53 = vpop.f32.mrf.mxu1 }
 0x452   : > { %v2151_v18 = vadd.f32 %v3822_v1, %v2150_v53 }
 0x454   : > { %v3959_v54 = vadd.f32 %v2151_v18, %v2036_v4 }
 0x456   : > { %2293 = vst.msk [vmem:[%s3829_s29 + $0x70] sm:$0xff] %vm755_vm3, %v3959_v54  ;;  %v2199_v45 = vsel %vm755_vm3, %v3959_v54, 0.0 }
 0x457   : > { %v2200_v2 = vadd.f32 %v2199_v45, %v2198_v59 }
 0x459   : > { %v2153_v37 = vpop.f32.mrf.mxu1 }
 0x45a   : > { %v2154_v25 = vadd.f32 %v3822_v1, %v2153_v37 }
 0x45c   : > { %v3972_v30 = vadd.f32 %v2154_v25, %v2037_v51 }
 0x45e   : > { %v2201_v40 = vsel %vm755_vm3, %v3972_v30, 0.0  ;;  %2294 = vst.msk [vmem:[%s3829_s29 + $0x78] sm:$0xff] %vm755_vm3, %v3972_v30 }
 0x45f   : > { %v2202_v0 = vadd.f32 %v2201_v40, %v2200_v2 }
 0x461   : > { %v2203_v43 = vrot.slane %v2202_v0, 4 }
 0x463   : > { %v2204_v27 = vadd.f32 %v2203_v43, %v2202_v0 }
 0x465   : > { %v2205_v17 = vrot.slane %v2204_v27, 2 }
 0x467   : > { %v2206_v58 = vadd.f32 %v2205_v17, %v2204_v27 }
 0x469   : > { %v2207_v1 = vrot.slane %v2206_v58, 1 }
 0x46b   : > { %v2208_v9 = vadd.f32 %v2207_v1, %v2206_v58 }
 0x46d   : > { %v2209_v38 = vmul.f32 0.0078125, %v2208_v9  ;;  %2296 = vst.msk [vmem:[%s459_s11] sm:$0x1] %vm2295_vm4, %v2208_v9 }
 0x46f   : > { %v2210_v50 = vsub.f32 %v3831_v26, %v2209_v38  ;;  %v2211_v56 = vsub.f32 %v3838_v35, %v2209_v38  ;;  %v2212_v5 = vsub.f32 %v3845_v47, %v2209_v38  ;;  %v2213_v20 = vsub.f32 %v3852_v62, %v2209_v38 }
 0x470   : > { %v2214_v60 = vsub.f32 %v3859_v12, %v2209_v38  ;;  %v2215_v46 = vsub.f32 %v3866_v57, %v2209_v38  ;;  %v2216_v26 = vsub.f32 %v3873_v61, %v2209_v38  ;;  %v2217_v62 = vsub.f32 %v3882_v39, %v2209_v38 }
 0x471   : > { %v2226_v33 = vmul.f32 %v2210_v50, %v2210_v50  ;;  %v2227_v11 = vmul.f32 %v2211_v56, %v2211_v56  ;;  %v2228_v44 = vmul.f32 %v2212_v5, %v2212_v5  ;;  %v2229_v23 = vmul.f32 %v2213_v20, %v2213_v20 }
 0x472   : > { %v2230_v35 = vmul.f32 %v2214_v60, %v2214_v60  ;;  %v2231_v32 = vmul.f32 %v2215_v46, %v2215_v46  ;;  %v2218_v57 = vsub.f32 %v3892_v16, %v2209_v38  ;;  %v2232_v14 = vmul.f32 %v2216_v26, %v2216_v26 }
 0x473   : > { %v2242_v8 = vsel %vm755_vm3, %v2226_v33, 0.0  ;;  %v2243_v19 = vsel %vm755_vm3, %v2227_v11, 0.0  ;;  %v2245_v47 = vsel %vm755_vm3, %v2228_v44, 0.0  ;;  %v2247_v12 = vsel %vm755_vm3, %v2229_v23, 0.0 }
 0x474   : > { %v2244_v13 = vadd.f32 %v2243_v19, %v2242_v8  ;;  %v2249_v28 = vsel %vm755_vm3, %v2230_v35, 0.0  ;;  %v2219_v48 = vsub.f32 %v3900_v52, %v2209_v38  ;;  %v2233_v3 = vmul.f32 %v2217_v62, %v2217_v62 }
 0x475   : > { %v2251_v61 = vsel %vm755_vm3, %v2231_v32, 0.0  ;;  %v2220_v4 = vsub.f32 %v3907_v55, %v2209_v38  ;;  %v2234_v53 = vmul.f32 %v2218_v57, %v2218_v57  ;;  %v2253_v39 = vsel %vm755_vm3, %v2232_v14, 0.0 }
 0x476   : > { %v2246_v31 = vadd.f32 %v2245_v47, %v2244_v13  ;;  %v2221_v18 = vsub.f32 %v3914_v24, %v2209_v38  ;;  %v2235_v7 = vmul.f32 %v2219_v48, %v2219_v48  ;;  %v2255_v16 = vsel %vm755_vm3, %v2233_v3, 0.0 }
 0x477   : > { %v2222_v6 = vsub.f32 %v3921_v42, %v2209_v38  ;;  %v2236_v41 = vmul.f32 %v2220_v4, %v2220_v4  ;;  %v2257_v52 = vsel %vm755_vm3, %v2234_v53, 0.0  ;;  %v2223_v21 = vsub.f32 %v3928_v29, %v2209_v38 }
 0x478   : > { %v2248_v10 = vadd.f32 %v2247_v12, %v2246_v31  ;;  %v2237_v34 = vmul.f32 %v2221_v18, %v2221_v18  ;;  %v2259_v55 = vsel %vm755_vm3, %v2235_v7, 0.0  ;;  %v2224_v37 = vsub.f32 %v3959_v54, %v2209_v38 }
 0x479   : > { %v2238_v45 = vmul.f32 %v2222_v6, %v2222_v6  ;;  %v2261_v24 = vsel %vm755_vm3, %v2236_v41, 0.0  ;;  %v2225_v59 = vsub.f32 %v3972_v30, %v2209_v38  ;;  %v2239_v2 = vmul.f32 %v2223_v21, %v2223_v21 }
 0x47a   : > { %v2250_v49 = vadd.f32 %v2249_v28, %v2248_v10  ;;  %v2263_v42 = vsel %vm755_vm3, %v2237_v34, 0.0  ;;  %v2240_v0 = vmul.f32 %v2224_v37, %v2224_v37 }
 0x47b   : > { %v2265_v29 = vsel %vm755_vm3, %v2238_v45, 0.0  ;;  %v2241_v27 = vmul.f32 %v2225_v59, %v2225_v59  ;;  %v2267_v17 = vsel %vm755_vm3, %v2239_v2, 0.0 }
 0x47c   : > { %v2252_v63 = vadd.f32 %v2251_v61, %v2250_v49  ;;  %v2269_v54 = vsel %vm755_vm3, %v2240_v0, 0.0 }
 0x47d   : > { %v2271_v9 = vsel %vm755_vm3, %v2241_v27, 0.0 }
 0x47e   : > { %v2254_v36 = vadd.f32 %v2253_v39, %v2252_v63 }
 0x480   : > { %v2256_v15 = vadd.f32 %v2255_v16, %v2254_v36 }
 0x482   : > { %v2258_v22 = vadd.f32 %v2257_v52, %v2256_v15 }
 0x484   : > { %v2260_v51 = vadd.f32 %v2259_v55, %v2258_v22 }
 0x486   : > { %v2262_v25 = vadd.f32 %v2261_v24, %v2260_v51 }
 0x488   : > { %v2264_v40 = vadd.f32 %v2263_v42, %v2262_v25 }
 0x48a   : > { %v2266_v43 = vadd.f32 %v2265_v29, %v2264_v40 }
 0x48c   : > { %v2268_v58 = vadd.f32 %v2267_v17, %v2266_v43 }
 0x48e   : > { %v2270_v1 = vadd.f32 %v2269_v54, %v2268_v58 }
 0x490   : > { %v2272_v50 = vadd.f32 %v2271_v9, %v2270_v1 }
 0x492   : > { %v2273_v30 = vrot.slane %v2272_v50, 4 }
 0x494   : > { %v2274_v38 = vadd.f32 %v2273_v30, %v2272_v50 }
 0x496   : > { %v2275_v56 = vrot.slane %v2274_v38, 2 }
 0x498   : > { %v2276_v5 = vadd.f32 %v2275_v56, %v2274_v38 }
 0x49a   : > { %v2277_v20 = vrot.slane %v2276_v5, 1 }
 0x49c   : > { %v2278_v33 = vadd.f32 %v2277_v20, %v2276_v5 }
 0x49e   : > { %2297 = vst.msk [vmem:[%s466_s12] sm:$0x1] %vm2295_vm4, %v2278_v33 }
 0x49f PF: > { %s21_s17 = sadd.s32 1, %s2732_s17   ;;  %s4051_s13 = smov %s2724_s15 }
 0x4a0   : > { %p18_p8 = scmp.ge.s32.totalorder %s21_s17, 6   ;;  %s4052_s14 = smov %s2728_s16 }
 0x4a1   : > { %s4053_s15 = smov %s4056_s18  ;;  %s4054_s16 = smov %s4060_s19 }
 0x4a2   :  { %20 = sbr.rel (!%p18_p8) target bundleno = 3 (0x3), region = 109 }

</bundles_post_ra>
